<compile_context>
chip_gen: v5e
topology: v5e:2x2
jax: 0.10.0
libtpu: 0.0.40
codegen_flags: <defaults>
</compile_context>

<pallas_src>
import functools
import math

import jax
import jax.numpy as jnp
from jax.experimental import pallas as pl
from jax.experimental.pallas import tpu as pltpu

EPS = 1e-5                 # nn.LayerNorm default eps
_KV_CHUNK = 512            # S-chunk for the K/V cache build
_FFN_CHUNK = 512           # F-chunk for the fused FC1->GELU->FC2 loop
_SQRT_2_OVER_PI = math.sqrt(2.0 / math.pi)


# ----------------------------------------------------------------------------
# In-kernel helpers (f32 math; MXU inputs are bf16)
# ----------------------------------------------------------------------------
def _layer_norm(x, gamma, beta):
    """LayerNorm over last dim. x: (T, D) f32; gamma/beta: (1, D) f32."""
    mu = jnp.mean(x, axis=-1, keepdims=True)
    xc = x - mu
    var = jnp.mean(xc * xc, axis=-1, keepdims=True)
    return xc * jax.lax.rsqrt(var + EPS) * gamma + beta


def _gelu(x):
    """tanh-approx GELU: the transcendental runs on the (otherwise idle) EUP
    slot instead of a long VALU erf polynomial over the (tq, F) hidden.
    TODO(synk): switch back to 0.5*x*(1+erf(x/sqrt(2))) if bit-matching the
    exact torch.nn.GELU() is required."""
    return 0.5 * x * (1.0 + jnp.tanh(_SQRT_2_OVER_PI * (x + 0.044715 * x * x * x)))


def _build_kv_cache(src_ref, s_total, d, wkv_ref, bv, k_ref, v_ref):
    """Project K/V once and store them (bf16) into VMEM scratch caches.

    src_ref: (1, S, D) bf16 ref; wkv_ref: (D, 2D) bf16 (K | V fused, k_proj
    has no bias); bv: (1, D) f32.  S-chunked so the f32 (chunk, 2D) matmul
    accumulator stays bounded at production S.
    """
    wkv = wkv_ref[...]
    off = 0
    while off < s_total:                       # static (trace-time) loop
        sz = min(_KV_CHUNK, s_total - off)
        blk = src_ref[0, pl.ds(off, sz), :]                       # (sz, D) bf16
        kv = jnp.dot(blk, wkv, preferred_element_type=jnp.float32)  # (sz, 2D)
        k_ref[pl.ds(off, sz), :] = kv[:, :d].astype(k_ref.dtype)
        v_ref[pl.ds(off, sz), :] = (kv[:, d:] + bv).astype(v_ref.dtype)
        off += sz


def _attention(q_in, k, v, wq, bq, wo, bo):
    """Single-head attention matching WhisperAttention (scale = 1/sqrt(D)).

    q_in: (tq, D) f32; k/v: (S, D) bf16 cached projections; wq/wo: (D, D)
    bf16; biases f32.
    """
    d = q_in.shape[-1]
    scale = 1.0 / math.sqrt(float(d))
    q = jnp.dot(q_in.astype(jnp.bfloat16), wq,
                preferred_element_type=jnp.float32) + bq          # (tq, D) f32
    q = (q * scale).astype(jnp.bfloat16)
    # q @ k^T via contraction over the last dims (flash-attn pattern — no
    # materialized transpose of the cached K).
    scores = jax.lax.dot_general(
        q, k, dimension_numbers=(((1,), (1,)), ((), ())),
        preferred_element_type=jnp.float32)                        # (tq, S) f32
    m = jnp.max(scores, axis=-1, keepdims=True)
    p = jnp.exp(scores - m)
    denom = jnp.sum(p, axis=-1, keepdims=True)
    probs = p * pl.reciprocal(denom, approx=True)                  # EUP recip
    ctx = jnp.dot(probs.astype(jnp.bfloat16), v,
                  preferred_element_type=jnp.float32)              # (tq, D)
    return jnp.dot(ctx.astype(jnp.bfloat16), wo,
                   preferred_element_type=jnp.float32) + bo        # (tq, D)


def _ffn(h, w1_ref, b1, w2_ref, b2):
    """F-chunked FC2(GELU(FC1(h))): never materializes the full (tq, F) hidden
    in f32; accumulates FC2 chunk products into a (tq, D) f32 accumulator."""
    tq, d = h.shape
    f_total = w1_ref.shape[1]
    h_bf = h.astype(jnp.bfloat16)
    acc = jnp.zeros((tq, d), jnp.float32)
    off = 0
    while off < f_total:                       # static (trace-time) loop
        sz = min(_FFN_CHUNK, f_total - off)
        hid = jnp.dot(h_bf, w1_ref[:, pl.ds(off, sz)],
                      preferred_element_type=jnp.float32) + b1[:, off:off + sz]
        hid = _gelu(hid)
        acc = acc + jnp.dot(hid.astype(jnp.bfloat16),
                            w2_ref[pl.ds(off, sz), :],
                            preferred_element_type=jnp.float32)
        off += sz
    return acc + b2


# ----------------------------------------------------------------------------
# Fused decoder-layer kernel:
#   h1  = LN(x + SelfAttn(x))            (K/V from the t==0 cache)
#   h2  = LN(h1 + CrossAttn(enc, h1))    (K/V from the t==0 cache)
#   out = LN(h2 + FC2(GELU(FC1(h2))))    [+ final decoder LN on the last layer]
# Grid: (B, T/tq); B "parallel", t "arbitrary" (KV caches carried across t).
# ----------------------------------------------------------------------------
def _decoder_layer_kernel(x_ref, enc_ref,
                          wkv1_ref, wq1_ref, wo1_ref,
                          wkv2_ref, wq2_ref, wo2_ref,
                          w1_ref, b1_ref, w2_ref, vec_ref,
                          o_ref,
                          k1_ref, v1_ref, k2_ref, v2_ref,
                          *, apply_final_ln):
    tq = o_ref.shape[1]
    d = o_ref.shape[2]
    t_len = x_ref.shape[1]
    s_len = enc_ref.shape[1]
    q_off = pl.multiple_of(pl.program_id(1) * tq, tq)

    # Packed small vectors: (16, D) f32.
    vecs = vec_ref[...]
    bv1, bq1, bo1 = vecs[0:1], vecs[1:2], vecs[2:3]
    g1, be1 = vecs[3:4], vecs[4:5]
    bv2, bq2, bo2 = vecs[5:6], vecs[6:7], vecs[7:8]
    g2, be2 = vecs[8:9], vecs[9:10]
    b2, g3, be3 = vecs[10:11], vecs[11:12], vecs[12:13]
    gf, bf = vecs[13:14], vecs[14:15]

    # Build the self-attn and cross-attn K/V caches once per batch element.
    @pl.when(pl.program_id(1) == 0)
    def _():
        _build_kv_cache(x_ref, t_len, d, wkv1_ref, bv1, k1_ref, v1_ref)
        _build_kv_cache(enc_ref, s_len, d, wkv2_ref, bv2, k2_ref, v2_ref)

    x_q = x_ref[0, pl.ds(q_off, tq), :].astype(jnp.float32)        # (tq, D) f32

    # ---- self-attention + residual + LN ----
    a1 = _attention(x_q, k1_ref[...], v1_ref[...],
                    wq1_ref[...], bq1, wo1_ref[...], bo1)
    h1 = _layer_norm(x_q + a1, g1, be1)

    # ---- cross-attention + residual + LN ----
    a2 = _attention(h1, k2_ref[...], v2_ref[...],
                    wq2_ref[...], bq2, wo2_ref[...], bo2)
    h2 = _layer_norm(h1 + a2, g2, be2)

    # ---- FFN + residual + LN (+ fused final decoder LN on the last layer) ----
    ff = _ffn(h2, w1_ref, b1_ref[...], w2_ref, b2)
    h3 = _layer_norm(h2 + ff, g3, be3)
    if apply_final_ln:
        h3 = _layer_norm(h3, gf, bf)
    o_ref[0] = h3.astype(o_ref.dtype)


# ----------------------------------------------------------------------------
# pallas_call wrapper
# ----------------------------------------------------------------------------
_SINGLE_BUFFER_OK = None


def _single_buffer_supported():
    """Probe whether pipeline_mode=pl.Buffered(1) is supported; fall back to
    default double-buffering if not (keeps the script runnable everywhere)."""
    global _SINGLE_BUFFER_OK
    if _SINGLE_BUFFER_OK is None:
        try:
            def _k(w_ref, o_ref):
                o_ref[...] = w_ref[...] + 1.0
            out = pl.pallas_call(
                _k,
                out_shape=jax.ShapeDtypeStruct((8, 128), jnp.float32),
                grid=(2,),
                in_specs=[pl.BlockSpec((8, 128), lambda i: (0, 0),
                                       pipeline_mode=pl.Buffered(1))],
                out_specs=pl.BlockSpec((8, 128), lambda i: (0, 0)),
            )(jnp.zeros((8, 128), jnp.float32))
            jax.block_until_ready(out)
            _SINGLE_BUFFER_OK = True
        except Exception:
            _SINGLE_BUFFER_OK = False
    return _SINGLE_BUFFER_OK


def _pick_tq(T):
    """Largest multiple of 8 (<=256) dividing T.
    TODO(synk): pad production T (e.g. 448) to a multiple of 256 so query-side
    matmuls fill the 256-row MXU on v6e/v7x."""
    for cand in (256, 128, 64, 32, 16, 8):
        if T % cand == 0:
            return cand
    return T


def _vmem_capacity_bytes():
    try:
        return int(pltpu.get_tpu_info().vmem_capacity_bytes)
    except Exception:
        return 128 * 1024 * 1024          # v5e/v6e physical


def _vmem_limit_bytes(T, S, D, F, tq, single_buffer):
    """Working-set estimate with headroom, clamped to 75% of physical VMEM
    (≈48 MiB on v7x, ≈96 MiB on v5e/v6e)."""
    bf16, f32 = 2, 4
    w_bufs = 1 if single_buffer else 2
    weights = w_bufs * (2 * (D * 2 * D + 2 * D * D) + 2 * D * F) * bf16
    kv_cache = 2 * (T + S) * D * bf16
    io = 2 * (T + S + tq) * D * bf16                    # x / enc / out (2 bufs)
    small = 2 * (16 * D + F) * f32
    live = (tq * (max(T, S) + min(F, _FFN_CHUNK) + 8 * D)
            + min(max(T, S), _KV_CHUNK) * 2 * D) * f32
    est = int(1.5 * (weights + kv_cache + io + small + live))
    cap = _vmem_capacity_bytes()
    return min(int(0.75 * cap), max(32 * 1024 * 1024, est))


def decoder_layer(x, enc, lp, *, apply_final_ln, out_dtype):
    B, T, D = x.shape
    S = enc.shape[1]
    F = lp["w1"].shape[1]
    tq = _pick_tq(T)
    nt = max(T // tq, 1)
    single = _single_buffer_supported()

    def winv(shape):
        """Grid-invariant operand (weights/biases): single-buffered if possible."""
        if single:
            return pl.BlockSpec(shape, lambda b, t: (0, 0),
                                pipeline_mode=pl.Buffered(1))
        return pl.BlockSpec(shape, lambda b, t: (0, 0))

    kernel = functools.partial(_decoder_layer_kernel,
                               apply_final_ln=apply_final_ln)

    return pl.pallas_call(
        kernel,
        out_shape=jax.ShapeDtypeStruct((B, T, D), out_dtype),
        grid=(B, nt),
        in_specs=[
            pl.BlockSpec((1, T, D), lambda b, t: (b, 0, 0)),   # x slab (bf16)
            pl.BlockSpec((1, S, D), lambda b, t: (b, 0, 0)),   # enc slab (bf16)
            winv((D, 2 * D)), winv((D, D)), winv((D, D)),      # self-attn W
            winv((D, 2 * D)), winv((D, D)), winv((D, D)),      # cross-attn W
            winv((D, F)), winv((1, F)), winv((F, D)),          # FFN W / b1
            winv((16, D)),                                     # packed vectors
        ],
        out_specs=pl.BlockSpec((1, tq, D), lambda b, t: (b, t, 0)),
        scratch_shapes=[
            pltpu.VMEM((T, D), jnp.bfloat16),   # self-attn K cache
            pltpu.VMEM((T, D), jnp.bfloat16),   # self-attn V cache
            pltpu.VMEM((S, D), jnp.bfloat16),   # cross-attn K cache
            pltpu.VMEM((S, D), jnp.bfloat16),   # cross-attn V cache
        ],
        compiler_params=pltpu.CompilerParams(
            # B stays "parallel" (>=2 keeps both v7x TensorCores busy);
            # t is "arbitrary" because the KV caches are carried across tiles.
            dimension_semantics=("parallel", "arbitrary"),
            vmem_limit_bytes=_vmem_limit_bytes(T, S, D, F, tq, single)),
    )(x, enc,
      lp["wkv1"], lp["wq1"], lp["wo1"],
      lp["wkv2"], lp["wq2"], lp["wo2"],
      lp["w1"], lp["b1"], lp["w2"], lp["vec"])


# ----------------------------------------------------------------------------
# Parameter construction (deterministic, synthetic)
# Weights stored (in_features, out_features) in bf16; small vectors packed
# into one (16, D) f32 array per layer (row 13/14 of the LAST layer hold the
# decoder-level final LayerNorm gamma/beta).
# ----------------------------------------------------------------------------
def _attn_weights(key, d):
    ks = jax.random.split(key, 7)
    wk = jax.random.normal(ks[0], (d, d), jnp.float32) * 0.02
    wv = jax.random.normal(ks[1], (d, d), jnp.float32) * 0.02
    bv = jax.random.normal(ks[2], (1, d), jnp.float32) * 0.02
    wq = jax.random.normal(ks[3], (d, d), jnp.float32) * 0.02
    bq = jax.random.normal(ks[4], (1, d), jnp.float32) * 0.02
    wo = jax.random.normal(ks[5], (d, d), jnp.float32) * 0.02
    bo = jax.random.normal(ks[6], (1, d), jnp.float32) * 0.02
    wkv = jnp.concatenate([wk, wv], axis=1).astype(jnp.bfloat16)  # k_proj: no bias
    return wkv, wq.astype(jnp.bfloat16), wo.astype(jnp.bfloat16), bv, bq, bo


def _ffn_weights(key, d, f):
    ks = jax.random.split(key, 4)
    w1 = jax.random.normal(ks[0], (d, f), jnp.float32) * 0.02
    b1 = jax.random.normal(ks[1], (1, f), jnp.float32) * 0.02
    w2 = jax.random.normal(ks[2], (f, d), jnp.float32) * 0.02
    b2 = jax.random.normal(ks[3], (1, d), jnp.float32) * 0.02
    return w1.astype(jnp.bfloat16), b1, w2.astype(jnp.bfloat16), b2


def init_decoder_params(key, d_model, n_layers, d_ff, max_len, vocab_size):
    assert n_layers >= 1
    keys = jax.random.split(key, 2 + 2 * n_layers)
    # NOTE: PyTorch padding_idx=50257 only zeroes that embedding row at init;
    # it is out of range for this small synthetic vocab, so it is a no-op here.
    embed_tokens = jax.random.normal(keys[0], (vocab_size, d_model),
                                     jnp.float32) * 0.02
    embed_positions = jax.random.normal(keys[1], (max_len, d_model),
                                        jnp.float32) * 0.02
    ones = jnp.ones((1, d_model), jnp.float32)
    zeros = jnp.zeros((1, d_model), jnp.float32)

    layers = []
    for i in range(n_layers):
        wkv1, wq1, wo1, bv1, bq1, bo1 = _attn_weights(keys[2 + 2 * i], d_model)
        wkv2, wq2, wo2, bv2, bq2, bo2 = _attn_weights(keys[3 + 2 * i], d_model)
        w1, b1, w2, b2 = _ffn_weights(
            jax.random.fold_in(keys[2 + 2 * i], 7), d_model, d_ff)
        # Packed (16, D): bv1,bq1,bo1,ln1_g,ln1_b, bv2,bq2,bo2,ln2_g,ln2_b,
        #                 b2,ln3_g,ln3_b, final_g,final_b, pad
        vec = jnp.concatenate(
            [bv1, bq1, bo1, ones, zeros,
             bv2, bq2, bo2, ones, zeros,
             b2, ones, zeros,
             ones, zeros,            # decoder final LayerNorm (used on last layer)
             zeros], axis=0)
        layers.append({"wkv1": wkv1, "wq1": wq1, "wo1": wo1,
                       "wkv2": wkv2, "wq2": wq2, "wo2": wo2,
                       "w1": w1, "b1": b1, "w2": w2, "vec": vec})
    return {"embed_tokens": embed_tokens,
            "embed_positions": embed_positions,
            "layers": layers}


# ----------------------------------------------------------------------------
# Full decoder forward (matches WhisperDecoder.forward)
# ----------------------------------------------------------------------------
def whisper_decoder_forward(params, token_ids, encoder_output):
    # token_ids: (B, T) int32; encoder_output: (B, S, D) float32
    T = token_ids.shape[1]
    x = jnp.take(params["embed_tokens"], token_ids, axis=0)          # (B, T, D)
    x = x + params["embed_positions"][:T][None, :, :]
    # Carry inter-layer activations in bf16 (f32 math stays inside the kernel).
    x = x.astype(jnp.bfloat16)
    enc = encoder_output.astype(jnp.bfloat16)

    layers = params["layers"]
    n = len(layers)
    for i, lp in enumerate(layers):
        last = (i == n - 1)
        x = decoder_layer(x, enc, lp,
                          apply_final_ln=last,     # final LN fused into last layer
                          out_dtype=jnp.float32 if last else jnp.bfloat16)
    return x


# ----------------------------------------------------------------------------
if __name__ == "__main__":
    # Lane-dense small shapes: d_model / d_ff are multiples of 128,
    # T and S are multiples of 8.
    d_model, n_layers, d_ff = 128, 2, 512
    max_len, vocab_size = 16, 64
    B, T, S = 2, 8, 16

    key = jax.random.PRNGKey(0)
    k_params, k_tok, k_enc = jax.random.split(key, 3)

    params = init_decoder_params(k_params, d_model, n_layers, d_ff,
                                 max_len, vocab_size)
    token_ids = jax.random.randint(k_tok, (B, T), 0, vocab_size,
                                   dtype=jnp.int32)
    encoder_output = jax.random.normal(k_enc, (B, S, d_model), jnp.float32)

    out = whisper_decoder_forward(params, token_ids, encoder_output)
    out = jax.block_until_ready(out)

    assert out.shape == (B, T, d_model), out.shape
    assert out.dtype == jnp.float32
    assert bool(jnp.all(jnp.isfinite(out)))
    print("KERNEL_OK")
</pallas_src>

<mosaic_0001>
module attributes {stable_mosaic.version = 11 : i64} {
  func.func @_k(%arg0: i32, %arg1: memref<8x128xf32, #tpu.memory_space<vmem>>, %arg2: memref<8x128xf32, #tpu.memory_space<vmem>>) attributes {dimension_semantics = [#tpu.dimension_semantics<arbitrary>], iteration_bounds = array<i64: 2>, scalar_prefetch = 0 : i64, scratch_operands = 0 : i64, tpu.core_type = #tpu.core_type<tc>, window_params = [{pipeline_mode = #tpu.pipeline_mode<synchronous>, transform_indices = @transform_0, window_bounds = array<i64: 8, 128>}, {pipeline_mode = #tpu.pipeline_mode<synchronous>, transform_indices = @transform_1, window_bounds = array<i64: 8, 128>}]} {
    %c0 = arith.constant 0 : index
    %c0_0 = arith.constant 0 : index
    %0 = vector.load %arg1[%c0, %c0_0] : memref<8x128xf32, #tpu.memory_space<vmem>>, vector<8x128xf32>
    %cst = arith.constant 1.000000e+00 : f32
    %1 = vector.broadcast %cst : f32 to vector<8x128xf32>
    %2 = arith.addf %0, %1 : vector<8x128xf32>
    %c0_1 = arith.constant 0 : index
    %c0_2 = arith.constant 0 : index
    %3 = vector.load %arg2[%c0_1, %c0_2] : memref<8x128xf32, #tpu.memory_space<vmem>>, vector<8x128xf32>
    tpu.vector_store %arg2[%c0_1, %c0_2], %2 {strides = array<i32>} : memref<8x128xf32, #tpu.memory_space<vmem>>, vector<8x128xf32>,
    return
  }
  func.func @transform_0(%arg0: i32) -> (i32, i32) {
    %c0_i32 = arith.constant 0 : i32
    %c0_i32_0 = arith.constant 0 : i32
    %c0_i32_1 = arith.constant 0 : i32
    return %c0_i32, %c0_i32_0 : i32, i32
  }
  func.func @transform_1(%arg0: i32) -> (i32, i32) {
    %c0_i32 = arith.constant 0 : i32
    %c0_i32_0 = arith.constant 0 : i32
    %c0_i32_1 = arith.constant 0 : i32
    return %c0_i32, %c0_i32_0 : i32, i32
  }
}

module attributes {stable_mosaic.version = 11 : i64} {
  func.func @_decoder_layer_kernel(%arg0: i32, %arg1: i32, %arg2: memref<1x8x128xbf16, #tpu.memory_space<vmem>>, %arg3: memref<1x16x128xbf16, #tpu.memory_space<vmem>>, %arg4: memref<128x256xbf16, #tpu.memory_space<vmem>>, %arg5: memref<128x128xbf16, #tpu.memory_space<vmem>>, %arg6: memref<128x128xbf16, #tpu.memory_space<vmem>>, %arg7: memref<128x256xbf16, #tpu.memory_space<vmem>>, %arg8: memref<128x128xbf16, #tpu.memory_space<vmem>>, %arg9: memref<128x128xbf16, #tpu.memory_space<vmem>>, %arg10: memref<128x512xbf16, #tpu.memory_space<vmem>>, %arg11: memref<1x512xf32, #tpu.memory_space<vmem>>, %arg12: memref<512x128xbf16, #tpu.memory_space<vmem>>, %arg13: memref<16x128xf32, #tpu.memory_space<vmem>>, %arg14: memref<1x8x128xbf16, #tpu.memory_space<vmem>>, %arg15: memref<8x128xbf16, #tpu.memory_space<vmem>>, %arg16: memref<8x128xbf16, #tpu.memory_space<vmem>>, %arg17: memref<16x128xbf16, #tpu.memory_space<vmem>>, %arg18: memref<16x128xbf16, #tpu.memory_space<vmem>>) attributes {dimension_semantics = [#tpu.dimension_semantics<parallel>, #tpu.dimension_semantics<arbitrary>], iteration_bounds = array<i64: 2, 1>, scalar_prefetch = 0 : i64, scratch_operands = 4 : i64, tpu.core_type = #tpu.core_type<tc>, window_params = [{transform_indices = @transform_0, window_bounds = array<i64: 1, 8, 128>}, {transform_indices = @transform_1, window_bounds = array<i64: 1, 16, 128>}, {pipeline_mode = #tpu.pipeline_mode<synchronous>, transform_indices = @transform_2, window_bounds = array<i64: 128, 256>}, {pipeline_mode = #tpu.pipeline_mode<synchronous>, transform_indices = @transform_3, window_bounds = array<i64: 128, 128>}, {pipeline_mode = #tpu.pipeline_mode<synchronous>, transform_indices = @transform_4, window_bounds = array<i64: 128, 128>}, {pipeline_mode = #tpu.pipeline_mode<synchronous>, transform_indices = @transform_5, window_bounds = array<i64: 128, 256>}, {pipeline_mode = #tpu.pipeline_mode<synchronous>, transform_indices = @transform_6, window_bounds = array<i64: 128, 128>}, {pipeline_mode = #tpu.pipeline_mode<synchronous>, transform_indices = @transform_7, window_bounds = array<i64: 128, 128>}, {pipeline_mode = #tpu.pipeline_mode<synchronous>, transform_indices = @transform_8, window_bounds = array<i64: 128, 512>}, {pipeline_mode = #tpu.pipeline_mode<synchronous>, transform_indices = @transform_9, window_bounds = array<i64: 1, 512>}, {pipeline_mode = #tpu.pipeline_mode<synchronous>, transform_indices = @transform_10, window_bounds = array<i64: 512, 128>}, {pipeline_mode = #tpu.pipeline_mode<synchronous>, transform_indices = @transform_11, window_bounds = array<i64: 16, 128>}, {transform_indices = @transform_12, window_bounds = array<i64: 1, 8, 128>}]} {
    %c8_i32 = arith.constant 8 : i32
    %0 = arith.muli %arg1, %c8_i32 : i32
    %1 = tpu.assume_multiple %0, 8 : i32
    %c0 = arith.constant 0 : index
    %c0_0 = arith.constant 0 : index
    %2 = vector.load %arg13[%c0, %c0_0] : memref<16x128xf32, #tpu.memory_space<vmem>>, vector<16x128xf32>
    %3 = vector.extract_strided_slice %2 {offsets = [0, 0], sizes = [1, 128], strides = [1, 1]} : vector<16x128xf32> to vector<1x128xf32>
    %4 = vector.extract_strided_slice %2 {offsets = [1, 0], sizes = [1, 128], strides = [1, 1]} : vector<16x128xf32> to vector<1x128xf32>
    %5 = vector.extract_strided_slice %2 {offsets = [2, 0], sizes = [1, 128], strides = [1, 1]} : vector<16x128xf32> to vector<1x128xf32>
    %6 = vector.extract_strided_slice %2 {offsets = [3, 0], sizes = [1, 128], strides = [1, 1]} : vector<16x128xf32> to vector<1x128xf32>
    %7 = vector.extract_strided_slice %2 {offsets = [4, 0], sizes = [1, 128], strides = [1, 1]} : vector<16x128xf32> to vector<1x128xf32>
    %8 = vector.extract_strided_slice %2 {offsets = [5, 0], sizes = [1, 128], strides = [1, 1]} : vector<16x128xf32> to vector<1x128xf32>
    %9 = vector.extract_strided_slice %2 {offsets = [6, 0], sizes = [1, 128], strides = [1, 1]} : vector<16x128xf32> to vector<1x128xf32>
    %10 = vector.extract_strided_slice %2 {offsets = [7, 0], sizes = [1, 128], strides = [1, 1]} : vector<16x128xf32> to vector<1x128xf32>
    %11 = vector.extract_strided_slice %2 {offsets = [8, 0], sizes = [1, 128], strides = [1, 1]} : vector<16x128xf32> to vector<1x128xf32>
    %12 = vector.extract_strided_slice %2 {offsets = [9, 0], sizes = [1, 128], strides = [1, 1]} : vector<16x128xf32> to vector<1x128xf32>
    %13 = vector.extract_strided_slice %2 {offsets = [10, 0], sizes = [1, 128], strides = [1, 1]} : vector<16x128xf32> to vector<1x128xf32>
    %14 = vector.extract_strided_slice %2 {offsets = [11, 0], sizes = [1, 128], strides = [1, 1]} : vector<16x128xf32> to vector<1x128xf32>
    %15 = vector.extract_strided_slice %2 {offsets = [12, 0], sizes = [1, 128], strides = [1, 1]} : vector<16x128xf32> to vector<1x128xf32>
    %c0_i32 = arith.constant 0 : i32
    %16 = arith.cmpi eq, %arg1, %c0_i32 : i32
    %17 = arith.extui %16 : i1 to i32
    %c0_i32_1 = arith.constant 0 : i32
    %18 = arith.cmpi ne, %17, %c0_i32_1 : i32
    scf.if %18 {
      %c0_64 = arith.constant 0 : index
      %c0_65 = arith.constant 0 : index
      %172 = vector.load %arg4[%c0_64, %c0_65] : memref<128x256xbf16, #tpu.memory_space<vmem>>, vector<128x256xbf16>
      %c0_66 = arith.constant 0 : index
      %c0_67 = arith.constant 0 : index
      %c0_68 = arith.constant 0 : index
      %173 = vector.load %arg2[%c0_66, %c0_67, %c0_68] : memref<1x8x128xbf16, #tpu.memory_space<vmem>>, vector<1x8x128xbf16>
      %174 = vector.shape_cast %173 : vector<1x8x128xbf16> to vector<8x128xbf16>
      %cst_69 = arith.constant dense<0.000000e+00> : vector<8x256xf32>
      %175 = tpu.matmul %174, %172, %cst_69 {dimension_numbers = #tpu.dot_dimension_numbers<[1], [0], [0], [1], [0, 0, 1, 1], [], []>} : vector<8x128xbf16>, vector<128x256xbf16>, vector<8x256xf32> -> vector<8x256xf32>
      %176 = vector.extract_strided_slice %175 {offsets = [0, 0], sizes = [8, 128], strides = [1, 1]} : vector<8x256xf32> to vector<8x128xf32>
      %177 = arith.truncf %176 : vector<8x128xf32> to vector<8x128xbf16>
      %c0_70 = arith.constant 0 : index
      %c0_71 = arith.constant 0 : index
      %178 = vector.load %arg15[%c0_70, %c0_71] : memref<8x128xbf16, #tpu.memory_space<vmem>>, vector<8x128xbf16>
      tpu.vector_store %arg15[%c0_70, %c0_71], %177 {strides = array<i32>} : memref<8x128xbf16, #tpu.memory_space<vmem>>, vector<8x128xbf16>,
      %179 = vector.extract_strided_slice %175 {offsets = [0, 128], sizes = [8, 128], strides = [1, 1]} : vector<8x256xf32> to vector<8x128xf32>
      %180 = vector.broadcast %3 : vector<1x128xf32> to vector<8x128xf32>
      %181 = arith.addf %179, %180 : vector<8x128xf32>
      %182 = arith.truncf %181 : vector<8x128xf32> to vector<8x128xbf16>
      %c0_72 = arith.constant 0 : index
      %c0_73 = arith.constant 0 : index
      %183 = vector.load %arg16[%c0_72, %c0_73] : memref<8x128xbf16, #tpu.memory_space<vmem>>, vector<8x128xbf16>
      tpu.vector_store %arg16[%c0_72, %c0_73], %182 {strides = array<i32>} : memref<8x128xbf16, #tpu.memory_space<vmem>>, vector<8x128xbf16>,
      %c0_74 = arith.constant 0 : index
      %c0_75 = arith.constant 0 : index
      %184 = vector.load %arg7[%c0_74, %c0_75] : memref<128x256xbf16, #tpu.memory_space<vmem>>, vector<128x256xbf16>
      %c0_76 = arith.constant 0 : index
      %c0_77 = arith.constant 0 : index
      %c0_78 = arith.constant 0 : index
      %185 = vector.load %arg3[%c0_76, %c0_77, %c0_78] : memref<1x16x128xbf16, #tpu.memory_space<vmem>>, vector<1x16x128xbf16>
      %186 = vector.shape_cast %185 : vector<1x16x128xbf16> to vector<16x128xbf16>
      %cst_79 = arith.constant dense<0.000000e+00> : vector<16x256xf32>
      %187 = tpu.matmul %186, %184, %cst_79 {dimension_numbers = #tpu.dot_dimension_numbers<[1], [0], [0], [1], [0, 0, 1, 1], [], []>} : vector<16x128xbf16>, vector<128x256xbf16>, vector<16x256xf32> -> vector<16x256xf32>
      %188 = vector.extract_strided_slice %187 {offsets = [0, 0], sizes = [16, 128], strides = [1, 1]} : vector<16x256xf32> to vector<16x128xf32>
      %189 = arith.truncf %188 : vector<16x128xf32> to vector<16x128xbf16>
      %c0_80 = arith.constant 0 : index
      %c0_81 = arith.constant 0 : index
      %190 = vector.load %arg17[%c0_80, %c0_81] : memref<16x128xbf16, #tpu.memory_space<vmem>>, vector<16x128xbf16>
      tpu.vector_store %arg17[%c0_80, %c0_81], %189 {strides = array<i32>} : memref<16x128xbf16, #tpu.memory_space<vmem>>, vector<16x128xbf16>,
      %191 = vector.extract_strided_slice %187 {offsets = [0, 128], sizes = [16, 128], strides = [1, 1]} : vector<16x256xf32> to vector<16x128xf32>
      %192 = vector.broadcast %8 : vector<1x128xf32> to vector<16x128xf32>
      %193 = arith.addf %191, %192 : vector<16x128xf32>
      %194 = arith.truncf %193 : vector<16x128xf32> to vector<16x128xbf16>
      %c0_82 = arith.constant 0 : index
      %c0_83 = arith.constant 0 : index
      %195 = vector.load %arg18[%c0_82, %c0_83] : memref<16x128xbf16, #tpu.memory_space<vmem>>, vector<16x128xbf16>
      tpu.vector_store %arg18[%c0_82, %c0_83], %194 {strides = array<i32>} : memref<16x128xbf16, #tpu.memory_space<vmem>>, vector<16x128xbf16>,
    } else {
    }
    %c0_2 = arith.constant 0 : index
    %19 = arith.index_cast %1 : i32 to index
    %c0_3 = arith.constant 0 : index
    %20 = vector.load %arg2[%c0_2, %19, %c0_3] : memref<1x8x128xbf16, #tpu.memory_space<vmem>>, vector<1x8x128xbf16>
    %21 = vector.shape_cast %20 : vector<1x8x128xbf16> to vector<8x128xbf16>
    %22 = arith.extf %21 : vector<8x128xbf16> to vector<8x128xf32>
    %c0_4 = arith.constant 0 : index
    %c0_5 = arith.constant 0 : index
    %23 = vector.load %arg15[%c0_4, %c0_5] : memref<8x128xbf16, #tpu.memory_space<vmem>>, vector<8x128xbf16>
    %c0_6 = arith.constant 0 : index
    %c0_7 = arith.constant 0 : index
    %24 = vector.load %arg16[%c0_6, %c0_7] : memref<8x128xbf16, #tpu.memory_space<vmem>>, vector<8x128xbf16>
    %c0_8 = arith.constant 0 : index
    %c0_9 = arith.constant 0 : index
    %25 = vector.load %arg5[%c0_8, %c0_9] : memref<128x128xbf16, #tpu.memory_space<vmem>>, vector<128x128xbf16>
    %c0_10 = arith.constant 0 : index
    %c0_11 = arith.constant 0 : index
    %26 = vector.load %arg6[%c0_10, %c0_11] : memref<128x128xbf16, #tpu.memory_space<vmem>>, vector<128x128xbf16>
    %27 = arith.truncf %22 : vector<8x128xf32> to vector<8x128xbf16>
    %cst = arith.constant dense<0.000000e+00> : vector<8x128xf32>
    %28 = tpu.matmul %27, %25, %cst {dimension_numbers = #tpu.dot_dimension_numbers<[1], [0], [0], [1], [0, 0, 1, 1], [], []>} : vector<8x128xbf16>, vector<128x128xbf16>, vector<8x128xf32> -> vector<8x128xf32>
    %29 = vector.broadcast %4 : vector<1x128xf32> to vector<8x128xf32>
    %30 = arith.addf %28, %29 : vector<8x128xf32>
    %cst_12 = arith.constant 0.0883883461 : f32
    %31 = vector.broadcast %cst_12 : f32 to vector<8x128xf32>
    %32 = arith.mulf %30, %31 : vector<8x128xf32>
    %33 = arith.truncf %32 : vector<8x128xf32> to vector<8x128xbf16>
    %cst_13 = arith.constant dense<0.000000e+00> : vector<8x8xf32>
    %34 = tpu.matmul %33, %23, %cst_13 {dimension_numbers = #tpu.dot_dimension_numbers<[1], [1], [0], [0], [0, 0, 1, 0], [], []>} : vector<8x128xbf16>, vector<8x128xbf16>, vector<8x8xf32> -> vector<8x8xf32>
    %cst_14 = arith.constant dense<0xFF800000> : vector<8xf32>
    %35 = vector.multi_reduction <maximumf>, %34, %cst_14 [1] : vector<8x8xf32> to vector<8xf32>
    %36 = vector.shape_cast %35 : vector<8xf32> to vector<8x1xf32>
    %37 = vector.broadcast %36 : vector<8x1xf32> to vector<8x8xf32>
    %38 = arith.subf %34, %37 : vector<8x8xf32>
    %39 = math.exp %38 : vector<8x8xf32>
    %cst_15 = arith.constant dense<0.000000e+00> : vector<8xf32>
    %40 = vector.multi_reduction <add>, %39, %cst_15 [1] : vector<8x8xf32> to vector<8xf32>
    %41 = vector.shape_cast %40 : vector<8xf32> to vector<8x1xf32>
    %42 = tpu.reciprocal %41 {approx = true} : vector<8x1xf32> -> vector<8x1xf32>
    %43 = vector.broadcast %42 : vector<8x1xf32> to vector<8x8xf32>
    %44 = arith.mulf %39, %43 : vector<8x8xf32>
    %45 = arith.truncf %44 : vector<8x8xf32> to vector<8x8xbf16>
    %cst_16 = arith.constant dense<0.000000e+00> : vector<8x128xf32>
    %46 = tpu.matmul %45, %24, %cst_16 {dimension_numbers = #tpu.dot_dimension_numbers<[1], [0], [0], [1], [0, 0, 1, 1], [], []>} : vector<8x8xbf16>, vector<8x128xbf16>, vector<8x128xf32> -> vector<8x128xf32>
    %47 = arith.truncf %46 : vector<8x128xf32> to vector<8x128xbf16>
    %cst_17 = arith.constant dense<0.000000e+00> : vector<8x128xf32>
    %48 = tpu.matmul %47, %26, %cst_17 {dimension_numbers = #tpu.dot_dimension_numbers<[1], [0], [0], [1], [0, 0, 1, 1], [], []>} : vector<8x128xbf16>, vector<128x128xbf16>, vector<8x128xf32> -> vector<8x128xf32>
    %49 = vector.broadcast %5 : vector<1x128xf32> to vector<8x128xf32>
    %50 = arith.addf %48, %49 : vector<8x128xf32>
    %51 = arith.addf %22, %50 : vector<8x128xf32>
    %cst_18 = arith.constant dense<0.000000e+00> : vector<8xf32>
    %52 = vector.multi_reduction <add>, %51, %cst_18 [1] : vector<8x128xf32> to vector<8xf32>
    %53 = vector.shape_cast %52 : vector<8xf32> to vector<8x1xf32>
    %cst_19 = arith.constant 1.280000e+02 : f32
    %54 = vector.broadcast %cst_19 : f32 to vector<8x1xf32>
    %55 = arith.divf %53, %54 : vector<8x1xf32>
    %56 = vector.broadcast %55 : vector<8x1xf32> to vector<8x128xf32>
    %57 = arith.subf %51, %56 : vector<8x128xf32>
    %58 = arith.mulf %57, %57 : vector<8x128xf32>
    %cst_20 = arith.constant dense<0.000000e+00> : vector<8xf32>
    %59 = vector.multi_reduction <add>, %58, %cst_20 [1] : vector<8x128xf32> to vector<8xf32>
    %60 = vector.shape_cast %59 : vector<8xf32> to vector<8x1xf32>
    %cst_21 = arith.constant 1.280000e+02 : f32
    %61 = vector.broadcast %cst_21 : f32 to vector<8x1xf32>
    %62 = arith.divf %60, %61 : vector<8x1xf32>
    %cst_22 = arith.constant 9.99999974E-6 : f32
    %63 = vector.broadcast %cst_22 : f32 to vector<8x1xf32>
    %64 = arith.addf %62, %63 : vector<8x1xf32>
    %65 = math.rsqrt %64 : vector<8x1xf32>
    %66 = vector.broadcast %65 : vector<8x1xf32> to vector<8x128xf32>
    %67 = arith.mulf %57, %66 : vector<8x128xf32>
    %68 = vector.broadcast %6 : vector<1x128xf32> to vector<8x128xf32>
    %69 = arith.mulf %67, %68 : vector<8x128xf32>
    %70 = vector.broadcast %7 : vector<1x128xf32> to vector<8x128xf32>
    %71 = arith.addf %69, %70 : vector<8x128xf32>
    %c0_23 = arith.constant 0 : index
    %c0_24 = arith.constant 0 : index
    %72 = vector.load %arg17[%c0_23, %c0_24] : memref<16x128xbf16, #tpu.memory_space<vmem>>, vector<16x128xbf16>
    %c0_25 = arith.constant 0 : index
    %c0_26 = arith.constant 0 : index
    %73 = vector.load %arg18[%c0_25, %c0_26] : memref<16x128xbf16, #tpu.memory_space<vmem>>, vector<16x128xbf16>
    %c0_27 = arith.constant 0 : index
    %c0_28 = arith.constant 0 : index
    %74 = vector.load %arg8[%c0_27, %c0_28] : memref<128x128xbf16, #tpu.memory_space<vmem>>, vector<128x128xbf16>
    %c0_29 = arith.constant 0 : index
    %c0_30 = arith.constant 0 : index
    %75 = vector.load %arg9[%c0_29, %c0_30] : memref<128x128xbf16, #tpu.memory_space<vmem>>, vector<128x128xbf16>
    %76 = arith.truncf %71 : vector<8x128xf32> to vector<8x128xbf16>
    %cst_31 = arith.constant dense<0.000000e+00> : vector<8x128xf32>
    %77 = tpu.matmul %76, %74, %cst_31 {dimension_numbers = #tpu.dot_dimension_numbers<[1], [0], [0], [1], [0, 0, 1, 1], [], []>} : vector<8x128xbf16>, vector<128x128xbf16>, vector<8x128xf32> -> vector<8x128xf32>
    %78 = vector.broadcast %9 : vector<1x128xf32> to vector<8x128xf32>
    %79 = arith.addf %77, %78 : vector<8x128xf32>
    %cst_32 = arith.constant 0.0883883461 : f32
    %80 = vector.broadcast %cst_32 : f32 to vector<8x128xf32>
    %81 = arith.mulf %79, %80 : vector<8x128xf32>
    %82 = arith.truncf %81 : vector<8x128xf32> to vector<8x128xbf16>
    %cst_33 = arith.constant dense<0.000000e+00> : vector<8x16xf32>
    %83 = tpu.matmul %82, %72, %cst_33 {dimension_numbers = #tpu.dot_dimension_numbers<[1], [1], [0], [0], [0, 0, 1, 0], [], []>} : vector<8x128xbf16>, vector<16x128xbf16>, vector<8x16xf32> -> vector<8x16xf32>
    %cst_34 = arith.constant dense<0xFF800000> : vector<8xf32>
    %84 = vector.multi_reduction <maximumf>, %83, %cst_34 [1] : vector<8x16xf32> to vector<8xf32>
    %85 = vector.shape_cast %84 : vector<8xf32> to vector<8x1xf32>
    %86 = vector.broadcast %85 : vector<8x1xf32> to vector<8x16xf32>
    %87 = arith.subf %83, %86 : vector<8x16xf32>
    %88 = math.exp %87 : vector<8x16xf32>
    %cst_35 = arith.constant dense<0.000000e+00> : vector<8xf32>
    %89 = vector.multi_reduction <add>, %88, %cst_35 [1] : vector<8x16xf32> to vector<8xf32>
    %90 = vector.shape_cast %89 : vector<8xf32> to vector<8x1xf32>
    %91 = tpu.reciprocal %90 {approx = true} : vector<8x1xf32> -> vector<8x1xf32>
    %92 = vector.broadcast %91 : vector<8x1xf32> to vector<8x16xf32>
    %93 = arith.mulf %88, %92 : vector<8x16xf32>
    %94 = arith.truncf %93 : vector<8x16xf32> to vector<8x16xbf16>
    %cst_36 = arith.constant dense<0.000000e+00> : vector<8x128xf32>
    %95 = tpu.matmul %94, %73, %cst_36 {dimension_numbers = #tpu.dot_dimension_numbers<[1], [0], [0], [1], [0, 0, 1, 1], [], []>} : vector<8x16xbf16>, vector<16x128xbf16>, vector<8x128xf32> -> vector<8x128xf32>
    %96 = arith.truncf %95 : vector<8x128xf32> to vector<8x128xbf16>
    %cst_37 = arith.constant dense<0.000000e+00> : vector<8x128xf32>
    %97 = tpu.matmul %96, %75, %cst_37 {dimension_numbers = #tpu.dot_dimension_numbers<[1], [0], [0], [1], [0, 0, 1, 1], [], []>} : vector<8x128xbf16>, vector<128x128xbf16>, vector<8x128xf32> -> vector<8x128xf32>
    %98 = vector.broadcast %10 : vector<1x128xf32> to vector<8x128xf32>
    %99 = arith.addf %97, %98 : vector<8x128xf32>
    %100 = arith.addf %71, %99 : vector<8x128xf32>
    %cst_38 = arith.constant dense<0.000000e+00> : vector<8xf32>
    %101 = vector.multi_reduction <add>, %100, %cst_38 [1] : vector<8x128xf32> to vector<8xf32>
    %102 = vector.shape_cast %101 : vector<8xf32> to vector<8x1xf32>
    %cst_39 = arith.constant 1.280000e+02 : f32
    %103 = vector.broadcast %cst_39 : f32 to vector<8x1xf32>
    %104 = arith.divf %102, %103 : vector<8x1xf32>
    %105 = vector.broadcast %104 : vector<8x1xf32> to vector<8x128xf32>
    %106 = arith.subf %100, %105 : vector<8x128xf32>
    %107 = arith.mulf %106, %106 : vector<8x128xf32>
    %cst_40 = arith.constant dense<0.000000e+00> : vector<8xf32>
    %108 = vector.multi_reduction <add>, %107, %cst_40 [1] : vector<8x128xf32> to vector<8xf32>
    %109 = vector.shape_cast %108 : vector<8xf32> to vector<8x1xf32>
    %cst_41 = arith.constant 1.280000e+02 : f32
    %110 = vector.broadcast %cst_41 : f32 to vector<8x1xf32>
    %111 = arith.divf %109, %110 : vector<8x1xf32>
    %cst_42 = arith.constant 9.99999974E-6 : f32
    %112 = vector.broadcast %cst_42 : f32 to vector<8x1xf32>
    %113 = arith.addf %111, %112 : vector<8x1xf32>
    %114 = math.rsqrt %113 : vector<8x1xf32>
    %115 = vector.broadcast %114 : vector<8x1xf32> to vector<8x128xf32>
    %116 = arith.mulf %106, %115 : vector<8x128xf32>
    %117 = vector.broadcast %11 : vector<1x128xf32> to vector<8x128xf32>
    %118 = arith.mulf %116, %117 : vector<8x128xf32>
    %119 = vector.broadcast %12 : vector<1x128xf32> to vector<8x128xf32>
    %120 = arith.addf %118, %119 : vector<8x128xf32>
    %c0_43 = arith.constant 0 : index
    %c0_44 = arith.constant 0 : index
    %121 = vector.load %arg11[%c0_43, %c0_44] : memref<1x512xf32, #tpu.memory_space<vmem>>, vector<1x512xf32>
    %122 = arith.truncf %120 : vector<8x128xf32> to vector<8x128xbf16>
    %cst_45 = arith.constant 0.000000e+00 : f32
    %123 = vector.broadcast %cst_45 : f32 to vector<8x128xf32>
    %c0_46 = arith.constant 0 : index
    %c0_47 = arith.constant 0 : index
    %124 = vector.load %arg10[%c0_46, %c0_47] : memref<128x512xbf16, #tpu.memory_space<vmem>>, vector<128x512xbf16>
    %cst_48 = arith.constant dense<0.000000e+00> : vector<8x512xf32>
    %125 = tpu.matmul %122, %124, %cst_48 {dimension_numbers = #tpu.dot_dimension_numbers<[1], [0], [0], [1], [0, 0, 1, 1], [], []>} : vector<8x128xbf16>, vector<128x512xbf16>, vector<8x512xf32> -> vector<8x512xf32>
    %126 = vector.broadcast %121 : vector<1x512xf32> to vector<8x512xf32>
    %127 = arith.addf %125, %126 : vector<8x512xf32>
    %cst_49 = arith.constant 5.000000e-01 : f32
    %128 = vector.broadcast %cst_49 : f32 to vector<8x512xf32>
    %129 = arith.mulf %128, %127 : vector<8x512xf32>
    %cst_50 = arith.constant 4.471500e-02 : f32
    %130 = vector.broadcast %cst_50 : f32 to vector<8x512xf32>
    %131 = arith.mulf %130, %127 : vector<8x512xf32>
    %132 = arith.mulf %131, %127 : vector<8x512xf32>
    %133 = arith.mulf %132, %127 : vector<8x512xf32>
    %134 = arith.addf %127, %133 : vector<8x512xf32>
    %cst_51 = arith.constant 0.797884583 : f32
    %135 = vector.broadcast %cst_51 : f32 to vector<8x512xf32>
    %136 = arith.mulf %135, %134 : vector<8x512xf32>
    %137 = math.tanh %136 : vector<8x512xf32>
    %cst_52 = arith.constant 1.000000e+00 : f32
    %138 = vector.broadcast %cst_52 : f32 to vector<8x512xf32>
    %139 = arith.addf %138, %137 : vector<8x512xf32>
    %140 = arith.mulf %129, %139 : vector<8x512xf32>
    %141 = arith.truncf %140 : vector<8x512xf32> to vector<8x512xbf16>
    %c0_53 = arith.constant 0 : index
    %c0_54 = arith.constant 0 : index
    %142 = vector.load %arg12[%c0_53, %c0_54] : memref<512x128xbf16, #tpu.memory_space<vmem>>, vector<512x128xbf16>
    %cst_55 = arith.constant dense<0.000000e+00> : vector<8x128xf32>
    %143 = tpu.matmul %141, %142, %cst_55 {dimension_numbers = #tpu.dot_dimension_numbers<[1], [0], [0], [1], [0, 0, 1, 1], [], []>} : vector<8x512xbf16>, vector<512x128xbf16>, vector<8x128xf32> -> vector<8x128xf32>
    %144 = arith.addf %123, %143 : vector<8x128xf32>
    %145 = vector.broadcast %13 : vector<1x128xf32> to vector<8x128xf32>
    %146 = arith.addf %144, %145 : vector<8x128xf32>
    %147 = arith.addf %120, %146 : vector<8x128xf32>
    %cst_56 = arith.constant dense<0.000000e+00> : vector<8xf32>
    %148 = vector.multi_reduction <add>, %147, %cst_56 [1] : vector<8x128xf32> to vector<8xf32>
    %149 = vector.shape_cast %148 : vector<8xf32> to vector<8x1xf32>
    %cst_57 = arith.constant 1.280000e+02 : f32
    %150 = vector.broadcast %cst_57 : f32 to vector<8x1xf32>
    %151 = arith.divf %149, %150 : vector<8x1xf32>
    %152 = vector.broadcast %151 : vector<8x1xf32> to vector<8x128xf32>
    %153 = arith.subf %147, %152 : vector<8x128xf32>
    %154 = arith.mulf %153, %153 : vector<8x128xf32>
    %cst_58 = arith.constant dense<0.000000e+00> : vector<8xf32>
    %155 = vector.multi_reduction <add>, %154, %cst_58 [1] : vector<8x128xf32> to vector<8xf32>
    %156 = vector.shape_cast %155 : vector<8xf32> to vector<8x1xf32>
    %cst_59 = arith.constant 1.280000e+02 : f32
    %157 = vector.broadcast %cst_59 : f32 to vector<8x1xf32>
    %158 = arith.divf %156, %157 : vector<8x1xf32>
    %cst_60 = arith.constant 9.99999974E-6 : f32
    %159 = vector.broadcast %cst_60 : f32 to vector<8x1xf32>
    %160 = arith.addf %158, %159 : vector<8x1xf32>
    %161 = math.rsqrt %160 : vector<8x1xf32>
    %162 = vector.broadcast %161 : vector<8x1xf32> to vector<8x128xf32>
    %163 = arith.mulf %153, %162 : vector<8x128xf32>
    %164 = vector.broadcast %14 : vector<1x128xf32> to vector<8x128xf32>
    %165 = arith.mulf %163, %164 : vector<8x128xf32>
    %166 = vector.broadcast %15 : vector<1x128xf32> to vector<8x128xf32>
    %167 = arith.addf %165, %166 : vector<8x128xf32>
    %168 = arith.truncf %167 : vector<8x128xf32> to vector<8x128xbf16>
    %c0_61 = arith.constant 0 : index
    %c0_62 = arith.constant 0 : index
    %c0_63 = arith.constant 0 : index
    %169 = vector.load %arg14[%c0_61, %c0_62, %c0_63] : memref<1x8x128xbf16, #tpu.memory_space<vmem>>, vector<1x8x128xbf16>
    %170 = vector.shape_cast %169 : vector<1x8x128xbf16> to vector<8x128xbf16>
    %171 = vector.shape_cast %168 : vector<8x128xbf16> to vector<1x8x128xbf16>
    tpu.vector_store %arg14[%c0_61, %c0_62, %c0_63], %171 {strides = array<i32>} : memref<1x8x128xbf16, #tpu.memory_space<vmem>>, vector<1x8x128xbf16>,
    return
  }
  func.func @transform_0(%arg0: i32, %arg1: i32) -> (i32, i32, i32) {
    %c0_i32 = arith.constant 0 : i32
    %c0_i32_0 = arith.constant 0 : i32
    %c0_i32_1 = arith.constant 0 : i32
    return %arg0, %c0_i32, %c0_i32_0 : i32, i32, i32
  }
  func.func @transform_1(%arg0: i32, %arg1: i32) -> (i32, i32, i32) {
    %c0_i32 = arith.constant 0 : i32
    %c0_i32_0 = arith.constant 0 : i32
    %c0_i32_1 = arith.constant 0 : i32
    return %arg0, %c0_i32, %c0_i32_0 : i32, i32, i32
  }
  func.func @transform_2(%arg0: i32, %arg1: i32) -> (i32, i32) {
    %c0_i32 = arith.constant 0 : i32
    %c0_i32_0 = arith.constant 0 : i32
    %c0_i32_1 = arith.constant 0 : i32
    return %c0_i32, %c0_i32_0 : i32, i32
  }
  func.func @transform_3(%arg0: i32, %arg1: i32) -> (i32, i32) {
    %c0_i32 = arith.constant 0 : i32
    %c0_i32_0 = arith.constant 0 : i32
    %c0_i32_1 = arith.constant 0 : i32
    return %c0_i32, %c0_i32_0 : i32, i32
  }
  func.func @transform_4(%arg0: i32, %arg1: i32) -> (i32, i32) {
    %c0_i32 = arith.constant 0 : i32
    %c0_i32_0 = arith.constant 0 : i32
    %c0_i32_1 = arith.constant 0 : i32
    return %c0_i32, %c0_i32_0 : i32, i32
  }
  func.func @transform_5(%arg0: i32, %arg1: i32) -> (i32, i32) {
    %c0_i32 = arith.constant 0 : i32
    %c0_i32_0 = arith.constant 0 : i32
    %c0_i32_1 = arith.constant 0 : i32
    return %c0_i32, %c0_i32_0 : i32, i32
  }
  func.func @transform_6(%arg0: i32, %arg1: i32) -> (i32, i32) {
    %c0_i32 = arith.constant 0 : i32
    %c0_i32_0 = arith.constant 0 : i32
    %c0_i32_1 = arith.constant 0 : i32
    return %c0_i32, %c0_i32_0 : i32, i32
  }
  func.func @transform_7(%arg0: i32, %arg1: i32) -> (i32, i32) {
    %c0_i32 = arith.constant 0 : i32
    %c0_i32_0 = arith.constant 0 : i32
    %c0_i32_1 = arith.constant 0 : i32
    return %c0_i32, %c0_i32_0 : i32, i32
  }
  func.func @transform_8(%arg0: i32, %arg1: i32) -> (i32, i32) {
    %c0_i32 = arith.constant 0 : i32
    %c0_i32_0 = arith.constant 0 : i32
    %c0_i32_1 = arith.constant 0 : i32
    return %c0_i32, %c0_i32_0 : i32, i32
  }
  func.func @transform_9(%arg0: i32, %arg1: i32) -> (i32, i32) {
    %c0_i32 = arith.constant 0 : i32
    %c0_i32_0 = arith.constant 0 : i32
    %c0_i32_1 = arith.constant 0 : i32
    return %c0_i32, %c0_i32_0 : i32, i32
  }
  func.func @transform_10(%arg0: i32, %arg1: i32) -> (i32, i32) {
    %c0_i32 = arith.constant 0 : i32
    %c0_i32_0 = arith.constant 0 : i32
    %c0_i32_1 = arith.constant 0 : i32
    return %c0_i32, %c0_i32_0 : i32, i32
  }
  func.func @transform_11(%arg0: i32, %arg1: i32) -> (i32, i32) {
    %c0_i32 = arith.constant 0 : i32
    %c0_i32_0 = arith.constant 0 : i32
    %c0_i32_1 = arith.constant 0 : i32
    return %c0_i32, %c0_i32_0 : i32, i32
  }
  func.func @transform_12(%arg0: i32, %arg1: i32) -> (i32, i32, i32) {
    %c0_i32 = arith.constant 0 : i32
    %c0_i32_0 = arith.constant 0 : i32
    return %arg0, %arg1, %c0_i32 : i32, i32, i32
  }
}

</mosaic_0001>

<bundles_post_ra>
// kernel: tpu_custom_call.1
= control target key start
LH: loop header
LB: loop body
LE: loop exit
PB: predicated region body
PF: predicated region fallthrough
CT: control target
= control target key end

     0   :  { %6 = vsyncpa [#allocation3], 0  ;;  %s287_s0 = inlined_call_operand.hbm [shape: f32[8,128], index: 0, kind: input, shape index: {}]   ;;  %s288_s1 = inlined_call_operand.hbm [shape: f32[8,128], index: 1, kind: output, shape index: {}]  }
   0x1   :  { %7 = vsyncpa [#allocation4], 0  ;;  %s270_s6 = smov 0  }
   0x2 LB: > { %s149_s7 = sadd.s32 4294967295, %s256_s6   ;;  %p150_p0 = scmp.ge.s32.totalorder %s256_s6, 1  ;;  %s256_s6 = sphi %s270_s6, %s13_s6  }
   0x3   : > { %p60_p1 = scmp.lt.s32.totalorder %s256_s6, 3  ;;  %s72_s10 = sshll.u32 %s287_s0, 4  ;;  %s73_s10 = int_to_ptr.hbm [resolvable:$true] %s72_s10 }
   0x4   : > { %p170_p3 = scmp.eq.s32.totalorder %s149_s7, 0  ;;  %s258_s11 = smov [#allocation2]  }
   0x5   : > { %p61_p2 = pnand %p150_p0, %p60_p1  ;;  %s74_s12 = sshll.u32 %s258_s11, 4  ;;  %s75_s12 = int_to_ptr.vmem [resolvable:$true] %s74_s12 }
   0x7   : > { %p166_p4 = pneg %p61_p2  ;;  %87 = sbr.rel (%p61_p2) target bundleno = 20 (0x14), region = 24 }
   0x9   : > { %p167_p5 = pnand %p170_p3, %p166_p4 }
   0xb   : > { %169 = dma.hbm_to_vmem [thread:$0]  (!%p167_p5), %s73_s10, 128, %s75_s12, [#allocation3]  }
   0xc   : > { %247 = dma.done.wait (%p170_p3), [#allocation3], 128  }
   0xd   : > { %249 = vsyncadd (%p170_p3), [#allocation3], 4294967168  ;;  %s259_s13 = smov [#allocation5]   ;;  %s109_s17 = sshll.u32 %s288_s1, 4  ;;  %v98_v0 = vld [vmem:[#allocation2] sm:$0xff]  ;;  %s110_s17 = int_to_ptr.hbm [resolvable:$true] %s109_s17 }
   0xe   : > { %s107_s14 = sshll.u32 %s259_s13, 4  ;;  %p172_p6 = scmp.eq.s32.totalorder %s149_s7, 1  ;;  %v99_v1 = vadd.f32 1.0, %v98_v0  ;;  %s108_s14 = int_to_ptr.vmem [resolvable:$true] %s107_s14 }
  0x10   : > { %100 = vst [vmem:[#allocation5] sm:$0xff] %v99_v1 }
  0x11   : > { %163 = dma.vmem_to_hbm [thread:$0]  (%p172_p6), %s108_s14, 128, %s110_s17, [#allocation4]  }
  0x12   : > { %251 = dma.done.wait (%p172_p6), [#allocation4], 128  }
  0x13   : > { %253 = vsyncadd (%p172_p6), [#allocation4], 4294967168 }
  0x14 PF: > { %s13_s6 = sadd.s32 1, %s256_s6  }
  0x15   : > { %p10_p7 = scmp.ge.s32.totalorder %s13_s6, 4  }
  0x17   :  { %12 = sbr.rel (!%p10_p7) target bundleno = 2 (0x2), region = 53 }
  0x1c   :  { %123 = vsyncpa [#allocation3], 1 }
  0x1d   :  { %125 = vsyncpa [#allocation3 + $0x1], 1 }
  0x1e   :  { %126 = vsyncpa [#allocation4], 1 }
  0x1f   :  { %128 = vsyncpa [#allocation4 + $0x1], 1 }

// kernel: tpu_custom_call.1
= control target key start
LH: loop header
LB: loop body
LE: loop exit
PB: predicated region body
PF: predicated region fallthrough
CT: control target
= control target key end

     0   :  { %s3957_s0 = inlined_call_operand.hbm [shape: bf16[2,8,128], index: 0, kind: input, shape index: {}]   ;;  %s3958_s1 = inlined_call_operand.hbm [shape: bf16[2,16,128], index: 1, kind: input, shape index: {}]   ;;  %s3959_s2 = inlined_call_operand.hbm [shape: bf16[128,256], index: 2, kind: input, shape index: {}]   ;;  %s3960_s3 = inlined_call_operand.hbm [shape: bf16[128,128], index: 3, kind: input, shape index: {}]   ;;  %s3961_s4 = inlined_call_operand.hbm [shape: bf16[128,128], index: 4, kind: input, shape index: {}]   ;;  %s3962_s5 = inlined_call_operand.hbm [shape: bf16[128,256], index: 5, kind: input, shape index: {}]   ;;  %s3963_s6 = inlined_call_operand.hbm [shape: bf16[128,128], index: 6, kind: input, shape index: {}]   ;;  %s3964_s7 = inlined_call_operand.hbm [shape: bf16[128,128], index: 7, kind: input, shape index: {}]   ;;  %s3965_s8 = inlined_call_operand.hbm [shape: bf16[128,512], index: 8, kind: input, shape index: {}]   ;;  %s3966_s9 = inlined_call_operand.vmem [shape: f32[1,512], index: 9, kind: input, shape index: {}]   ;;  %s3967_s10 = inlined_call_operand.hbm [shape: bf16[512,128], index: 10, kind: input, shape index: {}]   ;;  %s3968_s11 = inlined_call_operand.hbm [shape: f32[16,128], index: 11, kind: input, shape index: {}]   ;;  %s3969_s12 = inlined_call_operand.hbm [shape: bf16[2,8,128], index: 12, kind: output, shape index: {}]  }
   0x1   :  { %3976 = sst [smem:[#allocation36_spill]] %s3959_s2 }
   0x2   :  { %3977 = sst [smem:[#allocation37_spill]] %s3960_s3 }
   0x3   :  { %3978 = sst [smem:[#allocation38_spill]] %s3961_s4 }
   0x4   :  { %3979 = sst [smem:[#allocation39_spill]] %s3962_s5 }
   0x5   :  { %3980 = sst [smem:[#allocation40_spill]] %s3963_s6 }
   0x6   :  { %3981 = sst [smem:[#allocation41_spill]] %s3964_s7 }
   0x7   :  { %3982 = sst [smem:[#allocation42_spill]] %s3965_s8 }
   0x8   :  { %3983 = sst [smem:[#allocation43_spill]] %s3966_s9 }
   0x9   :  { %3984 = sst [smem:[#allocation44_spill]] %s3967_s10 }
   0xa   :  { %3985 = sst [smem:[#allocation45_spill]] %s3968_s11 }
   0xb   :  { %3986 = sst [smem:[#allocation46_spill]] %s3969_s12 }
   0xc   :  { %17 = vsyncpa [#allocation7], 0 }
   0xd   :  { %19 = vsyncpa [#allocation7 + $0x1], 0 }
   0xe   :  { %20 = vsyncpa [#allocation10], 0 }
   0xf   :  { %22 = vsyncpa [#allocation10 + $0x1], 0 }
  0x10   :  { %23 = vsyncpa [#allocation13], 0 }
  0x11   :  { %24 = vsyncpa [#allocation16], 0 }
  0x12   :  { %25 = vsyncpa [#allocation19], 0 }
  0x13   :  { %26 = vsyncpa [#allocation22], 0 }
  0x14   :  { %27 = vsyncpa [#allocation8], 0 }
  0x15   :  { %29 = vsyncpa [#allocation8 + $0x1], 0  ;;  %s3651_s21 = smov 0   ;;  %s3653_s22 = smov 0  }
  0x16   :  { %s3655_s23 = smov 0   ;;  %s3657_s24 = smov 0  }
  0x17   :  { %s3659_s25 = smov 0   ;;  %s3661_s26 = smov 0  }
  0x18 LB: > { %3987 = sst [smem:[#allocation33_spill]] %s3560_s24  ;;  %s3682_s27 = sadd.s32 4294967295, %s3568_s26   ;;  %s3568_s26 = sphi %s3661_s26, %s35_s26   ;;  %s3564_s25 = sphi %s3659_s25, %s4017_s25   ;;  %s3560_s24 = sphi %s3657_s24, %s4016_s24   ;;  %s3556_s23 = sphi %s3655_s23, %s4015_s23   ;;  %s3552_s22 = sphi %s3653_s22, %s4014_s22   ;;  %s3548_s21 = sphi %s3651_s21, %s4013_s21  }
  0x19   : > { %p2242_p0 = scmp.ge.s32.totalorder %s3568_s26, 1  ;;  %p68_p1 = scmp.eq.s32.totalorder %s3682_s27, 0 }
  0x1a   : > { %p342_p2 = scmp.lt.s32.totalorder %s3568_s26, 3  ;;  %s3988_s2 = sld [smem:[#allocation36_spill]] }
  0x1b   : > { %s3570_s14 = smov [#allocation11]   ;;  %p2252_p6 = scmp.ge.s32.totalorder %s3568_s26, 2 }
  0x1c   : > { %p3690_p3 = pnand %p2242_p0, %p342_p2  ;;  %s355_s15 = sshll.u32 %s3570_s14, 4  ;;  %s356_s15 = int_to_ptr.vmem [resolvable:$true] %s355_s15 }
  0x1d   : > { %s3991_s3 = sld [smem:[#allocation37_spill]]  ;;  %s3973_s20 = smov 128  }
  0x1e   : > { %p2985_p4 = pneg %p3690_p3  ;;  %s3572_s28 = smov 8  }
  0x1f   : > { %s3573_s29 = smov [#allocation12]   ;;  %s3974_s12 = smov 4  }
  0x20   : > { %s353_s30 = sshll.u32 %s3988_s2, 4  ;;  %p3698_p5 = pnand %p2985_p4, %p68_p1  ;;  %s354_s30 = int_to_ptr.hbm [resolvable:$true] %s353_s30 }
  0x21   : > { %s369_s14 = sshll.u32 %s3573_s29, 4  ;;  %s3971_s2 = smov 64   ;;  %s370_s14 = int_to_ptr.vmem [resolvable:$true] %s369_s14 }
  0x22   : > { %2988 = dma.hbm_to_vmem [thread:$0]  (!%p3698_p5), %s354_s30, 2048, %s356_s15, [#allocation10], %s3973_s20, %s3973_s20, %s3572_s28  }
  0x23   : > { %s367_s19 = sshll.u32 %s3991_s3, 4  ;;  %s3992_s5 = sld [smem:[#allocation39_spill]]  ;;  %s368_s19 = int_to_ptr.hbm [resolvable:$true] %s367_s19 }
  0x24   : > { %2991 = dma.hbm_to_vmem [thread:$0]  (!%p3698_p5), %s368_s19, 1024, %s370_s14, [#allocation13], %s3971_s2, %s3971_s2, %s3974_s12  }
  0x25   : > { %s3576_s24 = smov [#allocation15]   ;;  %s3993_s7 = sld [smem:[#allocation41_spill]] }
  0x26   : > { %s397_s9 = sshll.u32 %s3576_s24, 4  ;;  %s3577_s19 = smov [#allocation18]   ;;  %s398_s9 = int_to_ptr.vmem [resolvable:$true] %s397_s9 }
  0x27   : > { %s425_s14 = sshll.u32 %s3577_s19, 4  ;;  %s3994_s10 = sld [smem:[#allocation44_spill]]  ;;  %s426_s14 = int_to_ptr.vmem [resolvable:$true] %s425_s14 }
  0x28   : > { %s3995_s24 = smov 64   ;;  %s3996_s4 = sld [smem:[#allocation38_spill]] }
  0x29   : > { %s395_s3 = sshll.u32 %s3992_s5, 4  ;;  %s3579_s2 = smov [#allocation14]   ;;  %s396_s3 = int_to_ptr.hbm [resolvable:$true] %s395_s3 }
  0x2a   : > { %2997 = dma.hbm_to_vmem [thread:$0]  (!%p3698_p5), %s396_s3, 2048, %s398_s9, [#allocation16], %s3973_s20, %s3973_s20, %s3572_s28  }
  0x2b   : > { %s423_s29 = sshll.u32 %s3993_s7, 4  ;;  %s3578_s3 = smov [#allocation21]   ;;  %s424_s29 = int_to_ptr.hbm [resolvable:$true] %s423_s29 }
  0x2c   : > { %3003 = dma.hbm_to_vmem [thread:$0]  (!%p3698_p5), %s424_s29, 1024, %s426_s14, [#allocation19], %s3995_s24, %s3995_s24, %s3974_s12  }
  0x2d   : > { %s454_s18 = sshll.u32 %s3994_s10, 4  ;;  %s456_s9 = sshll.u32 %s3578_s3, 4  ;;  %s455_s18 = int_to_ptr.hbm [resolvable:$true] %s454_s18  ;;  %s457_s9 = int_to_ptr.vmem [resolvable:$true] %s456_s9 }
  0x2e   : > { %s381_s5 = sshll.u32 %s3996_s4, 4  ;;  %s383_s19 = sshll.u32 %s3579_s2, 4  ;;  %s382_s5 = int_to_ptr.hbm [resolvable:$true] %s381_s5  ;;  %s384_s19 = int_to_ptr.vmem [resolvable:$true] %s383_s19 }
  0x2f   : > { %3009 = dma.hbm_to_vmem [thread:$0]  (!%p3698_p5), %s455_s18, 4096, %s457_s9, [#allocation22], %s3995_s24, %s3995_s24, %s3974_s12  }
  0x30   : > { %s3997_s6 = sld [smem:[#allocation40_spill]]  ;;  %s3580_s3 = smov [#allocation17]  }
  0x31   : > { %2994 = dma.hbm_to_vmem [thread:$0]  (!%p3698_p5), %s382_s5, 1024, %s384_s19, [#allocation13], %s3995_s24, %s3995_s24, %s3974_s12  }
  0x32   : > { %s3998_s8 = sld [smem:[#allocation42_spill]]  ;;  %s411_s18 = sshll.u32 %s3580_s3, 4  ;;  %s412_s18 = int_to_ptr.vmem [resolvable:$true] %s411_s18 }
  0x33   : > { %s3581_s20 = smov [#allocation20]   ;;  %s3582_s9 = smov 256  }
  0x34   : > { %s439_s5 = sshll.u32 %s3581_s20, 4  ;;  %s3583_s2 = smov 16   ;;  %s440_s5 = int_to_ptr.vmem [resolvable:$true] %s439_s5 }
  0x35   : > { %s3999_s11 = sld [smem:[#allocation45_spill]]  ;;  %s4000_s3 = smov 128  }
  0x36   : > { %s409_s29 = sshll.u32 %s3997_s6, 4  ;;  %s54_s20 = sadd.s32 1, %s3556_s23  ;;  %s410_s29 = int_to_ptr.hbm [resolvable:$true] %s409_s29 }
  0x37   : > { %3000 = dma.hbm_to_vmem [thread:$0]  (!%p3698_p5), %s410_s29, 1024, %s412_s18, [#allocation16], %s3995_s24, %s3995_s24, %s3974_s12  }
  0x38   : > { %s437_s15 = sshll.u32 %s3998_s8, 4  ;;  %s3584_s29 = smov [#allocation23]   ;;  %s438_s15 = int_to_ptr.hbm [resolvable:$true] %s437_s15 }
  0x39   : > { %3006 = dma.hbm_to_vmem [thread:$0]  (!%p3698_p5), %s438_s15, 4096, %s440_s5, [#allocation19], %s3582_s9, %s3582_s9, %s3583_s2  }
  0x3a   : > { %s470_s30 = sshll.u32 %s3584_s29, 4  ;;  %s2241_s18 = sadd.s32 4294967294, %s3568_s26   ;;  %s471_s30 = int_to_ptr.vmem [resolvable:$true] %s470_s30 }
  0x3b   : > { %s468_s14 = sshll.u32 %s3999_s11, 4  ;;  %s47_s15 = sadd.s32 1, %s3564_s25  ;;  %s469_s14 = int_to_ptr.hbm [resolvable:$true] %s468_s14 }
  0x3c   : > { %3012 = dma.hbm_to_vmem [thread:$0]  (!%p3698_p5), %s469_s14, 256, %s471_s30, [#allocation22], %s4000_s3, %s4000_s3, %s3572_s28  }
  0x3d   : > { %p49_p7 = scmp.ge.s32.totalorder %s47_s15, 2  ;;  %p61_p8 = scmp.ne.s32.totalorder %s3556_s23, %s3552_s22 }
  0x3e   : > { %p62_p9 = scmp.eq.s32.totalorder %s3568_s26, 0  ;;  %p67_p10 = scmp.ne.s32.totalorder %s3552_s22, %s3548_s21 }
  0x3f   : > { %s4019_s15 = smov (%p49_p7, %s47_s15), 0  ;;  %p329_p13 = scmp.eq.s32.totalorder %s3682_s27, 1 }
  0x40   : > { %4001 = sst [smem:[#allocation34_spill]] %s4019_s15  ;;  %p3779_p11 = por %p62_p9, %p61_p8 }
  0x41   : > { %p3785_p12 = por %p68_p1, %p67_p10  ;;  %s51_s5 = ssub.s32 %s3564_s25, %s4019_s15 }
  0x42   : > { %p52_p0 = scmp.eq.s32.totalorder %s51_s5, 0  ;;  %p335_p2 = scmp.eq.s32.totalorder %s2241_s18, 1 }
  0x43   : > { %p3792_p4 = por %p329_p13, %p61_p8  ;;  %p3033_p5 = scmp.lt.s32.totalorder %s3568_s26, 2 }
  0x44   : > { %s3798_s2 = scalar_select %p52_p0, %s3556_s23, %s54_s20  }
  0x45   : > { %p3800_p7 = por %p335_p2, %p67_p10  ;;  %s484_s17 = sand.u32 1, %s3556_s23  }
  0x46   : > { %4005 = sst [smem:[#allocation35_spill]] %s3798_s2  ;;  %s2253_s14 = sshll.u32 %s484_s17, 2 }
  0x47   : > { %s2254_s29 = sshll.u32 %s3564_s25, 2  ;;  %s488_s5 = scalar_lea.vmem [#allocation6], %s2253_s14 }
  0x48   : > { %s492_s18 = scalar_lea.hbm %s3957_s0, %s2254_s29  ;;  %s496_s12 = sshll.u32 %s488_s5, 4  ;;  %s497_s12 = int_to_ptr.vmem [resolvable:$true] %s496_s12 }
  0x49   : > { %s494_s4 = sshll.u32 %s492_s18, 4  ;;  %p3014_p8 = pnand %p3033_p5, %p3779_p11  ;;  %s495_s4 = int_to_ptr.hbm [resolvable:$true] %s494_s4 }
  0x4a   : > { %s2255_s20 = sshll.u32 %s484_s17, 3  ;;  %s2801_s6 = sshll.u32 %s3564_s25, 3 }
  0x4b   : > { %s485_s7 = scalar_lea.sflag [#allocation7], %s484_s17  ;;  %s507_s8 = scalar_lea.vmem [#allocation9], %s2255_s20 }
  0x4c   : > { %3016 = dma.hbm_to_vmem [thread:$0]  (!%p3014_p8), %s495_s4, 64, %s497_s12, %s485_s7  }
  0x4d   : > { %s515_s10 = sshll.u32 %s507_s8, 4  ;;  %s503_s11 = sand.u32 1, %s3568_s26   ;;  %s516_s10 = int_to_ptr.vmem [resolvable:$true] %s515_s10 }
  0x4e   : > { %s512_s30 = scalar_lea.hbm %s3958_s1, %s2801_s6  ;;  %s504_s14 = scalar_lea.sflag [#allocation10], %s503_s11 }
  0x4f   : > { %s513_s29 = sshll.u32 %s512_s30, 4  ;;  %s4007_s3 = smov 4   ;;  %s514_s29 = int_to_ptr.hbm [resolvable:$true] %s513_s29 }
  0x50   : > { %3019 = dma.hbm_to_vmem [thread:$0]  (!%p3014_p8), %s514_s29, 128, %s516_s10, %s504_s14, %s3995_s24, %s3995_s24, %s4007_s3  }
  0x51   : > { %527 = sbr.rel (%p3690_p3) target bundleno = 2840 (0xb18), region = 68  ;;  %s3822_s4 = sand.u32 (!%p3690_p3), 1, %s3552_s22  }
  0x52   : > { %s2259_s7 = sshll.u32 (!%p3690_p3), %s3822_s4, 2  ;;  %s530_s8 = scalar_lea.sflag (!%p3690_p3), [#allocation7], %s3822_s4 }
  0x53   : > { %s3828_s6 = scalar_lea.vmem (!%p3690_p3), [#allocation6], %s2259_s7 }
  0x56   : > { %3515 = dma.done.wait (%p3785_p12), %s530_s8, 64  }
  0x57   : > { %3517 = vsyncadd (%p3785_p12), %s530_s8, 4294967232  ;;  %s539_s10 = sand.u32 1, %s3682_s27   ;;  %s2260_s11 = sshll.u32 %s3822_s4, 3 }
  0x58   : > { %s540_s12 = scalar_lea.sflag [#allocation10], %s539_s10  ;;  %s3836_s13 = scalar_lea.vmem [#allocation9], %s2260_s11 }
  0x59   : > { %3519 = dma.done.wait (%p3785_p12), %s540_s12, 128  }
  0x5a   : > { %3521 = vsyncadd (%p3785_p12), %s540_s12, 4294967168 }
  0x5b   : > { %3523 = dma.done.wait (%p68_p1), [#allocation10], 2048  }
  0x5c   : > { %3525 = vsyncadd (%p68_p1), [#allocation10], 4294965248 }
  0x5d   : > { %3527 = dma.done.wait (%p68_p1), [#allocation13], 2048  }
  0x5e   : > { %3529 = vsyncadd (%p68_p1), [#allocation13], 4294965248 }
  0x5f   : > { %3531 = dma.done.wait (%p68_p1), [#allocation16], 3072  }
  0x60   : > { %3533 = vsyncadd (%p68_p1), [#allocation16], 4294964224 }
  0x61   : > { %3535 = dma.done.wait (%p68_p1), [#allocation19], 5120  }
  0x62   : > { %3537 = vsyncadd (%p68_p1), [#allocation19], 4294962176 }
  0x63   : > { %3539 = dma.done.wait (%p68_p1), [#allocation22], 4352  }
  0x64   : > { %3541 = vsyncadd (%p68_p1), [#allocation22], 4294962944  ;;  %v2329_v0 = vld [vmem:[#allocation11 + $0x70] sm:$0xf]  ;;  %v2817_v1 = vld [vmem:[#allocation11 + $0x74] sm:$0xf0] }
  0x65   : > { %v2321_v2 = vld [vmem:[#allocation11 + $0x60] sm:$0xf]  ;;  %v2330_v3 = vor.u32 %v2817_v1, %v2329_v0  ;;  %v2815_v4 = vld [vmem:[#allocation11 + $0x64] sm:$0xf0]  ;;  %v2313_v6 = vld [vmem:[#allocation11 + $0x50] sm:$0xf] }
  0x66   : > { %v2322_v5 = vor.u32 %v2815_v4, %v2321_v2  ;;  %v2813_v7 = vld [vmem:[#allocation11 + $0x54] sm:$0xf0]  ;;  %v2305_v9 = vld [vmem:[#allocation11 + $0x40] sm:$0xf]  ;;  %v2811_v10 = vld [vmem:[#allocation11 + $0x44] sm:$0xf0] }
  0x67   : > { %740 = vmatpush.bf16.msra.mxu0 %v2330_v3  ;;  %v2314_v8 = vor.u32 %v2813_v7, %v2313_v6  ;;  %v2306_v11 = vor.u32 %v2811_v10, %v2305_v9  ;;  %v2297_v12 = vld [vmem:[#allocation11 + $0x30] sm:$0xf]  ;;  %v2809_v13 = vld [vmem:[#allocation11 + $0x34] sm:$0xf0]  ;;  %v2289_v15 = vld [vmem:[#allocation11 + $0x20] sm:$0xf] }
  0x68   : > { %v2298_v14 = vor.u32 %v2809_v13, %v2297_v12  ;;  %v2807_v16 = vld [vmem:[#allocation11 + $0x24] sm:$0xf0]  ;;  %v2281_v18 = vld [vmem:[#allocation11 + $0x10] sm:$0xf]  ;;  %v2805_v19 = vld [vmem:[#allocation11 + $0x14] sm:$0xf0] }
  0x69   : > { %v2290_v17 = vor.u32 %v2807_v16, %v2289_v15  ;;  %v2282_v20 = vor.u32 %v2805_v19, %v2281_v18  ;;  %v2273_v21 = vld [vmem:[#allocation11] sm:$0xf]  ;;  %v2803_v22 = vld [vmem:[#allocation11 + $0x4] sm:$0xf0]  ;;  %v2842_v24 = vld [vmem:[#allocation12 + $0x38] sm:$0xff]  ;;  %vm1048_vm0 = vcmask 1043456  }
  0x6a   : > { %v2274_v23 = vor.u32 %v2803_v22, %v2273_v21  ;;  %v659_v25 = vld [vmem:[%s3828_s6] sm:$0xf]  ;;  %v2816_v26 = vld [vmem:[#allocation11 + $0x74] sm:$0xf]  ;;  %v2331_v27 = vld [vmem:[#allocation11 + $0x78] sm:$0xf0] }
  0x6b   : > { %741 = vmatpush.bf16.msra.mxu0 %v2322_v5  ;;  %v2814_v28 = vld [vmem:[#allocation11 + $0x64] sm:$0xf]  ;;  %v2841_v29 = vld [vmem:[#allocation12 + $0x30] sm:$0xff]  ;;  %v2334_v30 = vor.u32 %v2816_v26, %v2331_v27  ;;  %v2323_v31 = vld [vmem:[#allocation11 + $0x68] sm:$0xf0]  ;;  %vm1032_vm1 = vcmask 64512  }
  0x6c   : > { %v2326_v32 = vor.u32 %v2814_v28, %v2323_v31  ;;  %v2812_v33 = vld [vmem:[#allocation11 + $0x54] sm:$0xf]  ;;  %v2315_v34 = vld [vmem:[#allocation11 + $0x58] sm:$0xf0]  ;;  %v2840_v35 = vld [vmem:[#allocation12 + $0x28] sm:$0xff]  ;;  %vm1280_vm6 = vcmask 130048  }
  0x6d   : > { %753 = vmatpush.bf16.msra.mxu1 %v2334_v30  ;;  %v2318_v36 = vor.u32 %v2812_v33, %v2315_v34  ;;  %v2810_v37 = vld [vmem:[#allocation11 + $0x44] sm:$0xf]  ;;  %v2307_v38 = vld [vmem:[#allocation11 + $0x48] sm:$0xf0]  ;;  %v2808_v41 = vld [vmem:[#allocation11 + $0x34] sm:$0xf] }
  0x6e   : > { %v2839_v39 = vld [vmem:[#allocation12 + $0x20] sm:$0xff]  ;;  %v2310_v40 = vor.u32 %v2810_v37, %v2307_v38  ;;  %v2299_v42 = vld [vmem:[#allocation11 + $0x38] sm:$0xf0]  ;;  %v2837_v45 = vld [vmem:[#allocation12 + $0x10] sm:$0xff]  ;;  %s4008_s15 = sld [smem:[#allocation43_spill]]  ;;  %s634_s20 = scalar_lea.vmem [#allocation24], %s2259_s7 }
  0x6f   : > { %742 = vmatpush.bf16.msra.mxu0 %v2314_v8  ;;  %v2838_v43 = vld [vmem:[#allocation12 + $0x18] sm:$0xff]  ;;  %v2302_v44 = vor.u32 %v2808_v41, %v2299_v42  ;;  %v2836_v46 = vld [vmem:[#allocation12 + $0x8] sm:$0xff]  ;;  %v2835_v47 = vld [vmem:[#allocation12] sm:$0xff]  ;;  %s4009_s16 = sld [smem:[#allocation33_spill]]  ;;  %s2048_s30 = sshll.u32 %s634_s20, 4  ;;  %s2049_s30 = int_to_ptr.vmem [resolvable:$true] %s2048_s30 }
  0x70   : > { %v3864_v48 = vld [vmem:[%s3828_s6] sm:$0xf]  ;;  %v2806_v49 = vld [vmem:[#allocation11 + $0x24] sm:$0xf]  ;;  %v2804_v52 = vld [vmem:[#allocation11 + $0x14] sm:$0xf] }
  0x71   : > { %754 = vmatpush.bf16.msra.mxu1 %v2326_v32  ;;  %v2291_v50 = vld [vmem:[#allocation11 + $0x28] sm:$0xf0]  ;;  %v2283_v53 = vld [vmem:[#allocation11 + $0x18] sm:$0xf0]  ;;  %v2802_v55 = vld [vmem:[#allocation11 + $0x4] sm:$0xf] }
  0x72   : > { %v2294_v51 = vor.u32 %v2806_v49, %v2291_v50  ;;  %v2286_v54 = vor.u32 %v2804_v52, %v2283_v53  ;;  %v2275_v56 = vld [vmem:[#allocation11 + $0x8] sm:$0xf0]  ;;  %v2832_v60 = vld [vmem:[#allocation15 + $0x74] sm:$0xf]  ;;  %v2399_v61 = vld [vmem:[#allocation15 + $0x78] sm:$0xf0] }
  0x73   : > { %743 = vmatpush.bf16.msra.mxu0 %v2306_v11  ;;  %v2278_v57 = vor.u32 %v2802_v55, %v2275_v56  ;;  %v2830_v62 = vld [vmem:[#allocation15 + $0x64] sm:$0xf]  ;;  %v2402_v63 = vor.u32 %v2832_v60, %v2399_v61  ;;  %v2391_v0 = vld [vmem:[#allocation15 + $0x68] sm:$0xf0]  ;;  %v2828_v11 = vld [vmem:[#allocation15 + $0x54] sm:$0xf] }
  0x74   : > { %v2394_v2 = vor.u32 %v2830_v62, %v2391_v0  ;;  %v3867_v4 = vld [vmem:[#allocation23] sm:$0xff]  ;;  %v2383_v12 = vld [vmem:[#allocation15 + $0x58] sm:$0xf0]  ;;  %v2375_v15 = vld [vmem:[#allocation15 + $0x48] sm:$0xf0]  ;;  %s4010_s18 = sld [smem:[#allocation46_spill]] }
  0x75   : > { %755 = vmatpush.bf16.msra.mxu1 %v2318_v36  ;;  %890 = vmatpush.bf16.msra.mxu3 %v2402_v63  ;;  %v955_v5 = vperm.slane %v3867_v4, 1  ;;  %v2826_v13 = vld [vmem:[#allocation15 + $0x44] sm:$0xf]  ;;  %v2367_v18 = vld [vmem:[#allocation15 + $0x38] sm:$0xf0]  ;;  %v2848_v49 = vld [vmem:[#allocation14 + $0x28] sm:$0xff] }
  0x76   : > { %v2378_v16 = vor.u32 %v2826_v13, %v2375_v15  ;;  %v2359_v21 = vld [vmem:[#allocation15 + $0x28] sm:$0xf0]  ;;  %v2818_v26 = vld [vmem:[#allocation15 + $0x4] sm:$0xf]  ;;  %v908_v50 = vperm.slane %v3867_v4, 5  ;;  %s2798_s28 = sshll.u32 %s4009_s16, 2 }
  0x77   : > { %744 = vmatpush.bf16.msra.mxu0 %v2298_v14  ;;  %v2386_v14 = vor.u32 %v2828_v11, %v2383_v12  ;;  %v2343_v27 = vld [vmem:[#allocation15 + $0x8] sm:$0xf0]  ;;  %v2843_v0 = vld [vmem:[#allocation14] sm:$0xff]  ;;  %v3585_v11 = vmov 128.0   ;;  %v2397_v12 = vld [vmem:[#allocation15 + $0x70] sm:$0xf] }
  0x78   : > { %v2346_v28 = vor.u32 %v2818_v26, %v2343_v27  ;;  %v2833_v13 = vld [vmem:[#allocation15 + $0x74] sm:$0xf0]  ;;  %v2365_v27 = vld [vmem:[#allocation15 + $0x30] sm:$0xf]  ;;  %s2035_s14 = scalar_lea.sflag [#allocation8], %s3822_s4 }
  0x79   : > { %756 = vmatpush.bf16.msra.mxu1 %v2310_v40  ;;  %891 = vmatpush.bf16.msra.mxu3 %v2394_v2  ;;  %v2398_v15 = vor.u32 %v2833_v13, %v2397_v12 }
  0x7a   : > { %s2046_s5 = scalar_lea.hbm %s4010_s18, %s2798_s28  ;;  %s3482_s11 = scalar_lea.hbm %s4010_s18, 8 }
  0x7b   : > { %745 = vmatpush.bf16.msra.mxu0 %v2290_v17  ;;  %v2824_v17 = vld [vmem:[#allocation15 + $0x34] sm:$0xf]  ;;  %876 = vmatpush.bf16.msra.mxu2 %v2398_v15  ;;  %s2050_s29 = sshll.u32 %s2046_s5, 4  ;;  %s2051_s29 = int_to_ptr.hbm [resolvable:$true] %s2050_s29 }
  0x7c   : > { %v2370_v19 = vor.u32 %v2824_v17, %v2367_v18  ;;  %s3476_s3 = sshra.s32 %s2051_s29, 4  ;;  %s3477_s3 = int_to_ptr.hbm [resolvable:$true] %s3476_s3 }
  0x7d   : > { %757 = vmatpush.bf16.msra.mxu1 %v2302_v44  ;;  %892 = vmatpush.bf16.msra.mxu3 %v2386_v14  ;;  %v2389_v14 = vld [vmem:[#allocation15 + $0x60] sm:$0xf]  ;;  %s3478_s8 = scalar_lea.hbm %s3477_s3, 4  ;;  %p3483_p10 = scmp.lt.s32.totalorder %s3477_s3, %s4010_s18 }
  0x7e   : > { %p3479_p1 = scmp.ne.s32.totalorder %s3477_s3, %s3478_s8  ;;  %p3484_p11 = scmp.lt.s32.totalorder %s3482_s11, %s3478_s8 }
  0x7f   : > { %746 = vmatpush.bf16.msra.mxu0 %v2282_v20  ;;  %v2822_v20 = vld [vmem:[#allocation15 + $0x24] sm:$0xf] }
  0x80   : > { %v2362_v22 = vor.u32 %v2822_v20, %v2359_v21  ;;  %v2829_v20 = vld [vmem:[#allocation15 + $0x54] sm:$0xf0]  ;;  %p3480_p3 = pnand %p3479_p1, %p3792_p4  ;;  %p3485_p12 = por %p3484_p11, %p3483_p10 }
  0x81   : > { %758 = vmatpush.bf16.msra.mxu1 %v2294_v51  ;;  %893 = vmatpush.bf16.msra.mxu3 %v2378_v16  ;;  %v2847_v51 = vld [vmem:[#allocation14 + $0x20] sm:$0xff]  ;;  %v2831_v16 = vld [vmem:[#allocation15 + $0x64] sm:$0xf0]  ;;  %v2860_v21 = vld [vmem:[#allocation17 + $0x38] sm:$0xff] }
  0x82   : > { %v2390_v17 = vor.u32 %v2831_v16, %v2389_v14  ;;  %p3481_p9 = pneg %p3480_p3 }
  0x83   : > { %747 = vmatpush.bf16.msra.mxu0 %v2274_v23  ;;  %v2820_v23 = vld [vmem:[#allocation15 + $0x14] sm:$0xf] }
  0x84   : > { %877 = vmatpush.bf16.msra.mxu2 %v2390_v17  ;;  %p3486_p13 = pnand %p3485_p12, %p3481_p9 }
  0x85   : > { %759 = vmatpush.bf16.msra.mxu1 %v2286_v54  ;;  %894 = vmatpush.bf16.msra.mxu3 %v2370_v19  ;;  %v2846_v54 = vld [vmem:[#allocation14 + $0x18] sm:$0xff]  ;;  %v2381_v19 = vld [vmem:[#allocation15 + $0x50] sm:$0xf] }
  0x86   : > { %748 = vmatmul.bf16.vlgmr.msra.gmra.mxu0 %v659_v25 }
  0x87   : > { %1004 = vmatpush.bf16.msrb.mxu0 %v2842_v24  ;;  %v2351_v24 = vld [vmem:[#allocation15 + $0x18] sm:$0xf0] }
  0x89   : > { %760 = vmatpush.bf16.msra.mxu1 %v2278_v57  ;;  %895 = vmatpush.bf16.msra.mxu3 %v2362_v22  ;;  %v2845_v57 = vld [vmem:[#allocation14 + $0x10] sm:$0xff] }
  0x8b   : > { %1005 = vmatpush.bf16.msrb.mxu0 %v2841_v29  ;;  %v768_v29 = vperm.slane %v3867_v4, 0 }
  0x8c   : > { %761 = vmatmul.bf16.vlgmr.msra.gmra.mxu1 %v659_v25  ;;  %v2354_v25 = vor.u32 %v2820_v23, %v2351_v24  ;;  %v2373_v23 = vld [vmem:[#allocation15 + $0x40] sm:$0xf]  ;;  %v2827_v24 = vld [vmem:[#allocation15 + $0x44] sm:$0xf0] }
  0x8d   : > { %v2374_v26 = vor.u32 %v2827_v24, %v2373_v23  ;;  %v2868_v24 = vld [vmem:[#allocation18 + $0x38] sm:$0xff] }
  0x8e   : > { %896 = vmatpush.bf16.msra.mxu3 %v2354_v25 }
  0x8f   : > { %1006 = vmatpush.bf16.msrb.mxu0 %v2840_v35 }
  0x92   : > { %897 = vmatpush.bf16.msra.mxu3 %v2346_v28  ;;  %v2825_v28 = vld [vmem:[#allocation15 + $0x34] sm:$0xf0] }
  0x93   : > { %1007 = vmatpush.bf16.msrb.mxu0 %v2839_v39  ;;  %v3873_v39 = vld [vmem:[%s3836_s13] sm:$0xff] }
  0x95   : > { %898 = vmatmul.bf16.vlgmr.msra.gmra.mxu3 %v3873_v39 }
  0x97   : > { %1008 = vmatpush.bf16.msrb.mxu0 %v2838_v43 }
  0x9b   : > { %1009 = vmatpush.bf16.msrb.mxu0 %v2837_v45  ;;  %v2850_v45 = vld [vmem:[#allocation14 + $0x38] sm:$0xff] }
  0x9f   : > { %1010 = vmatpush.bf16.msrb.mxu0 %v2836_v46  ;;  %v2849_v46 = vld [vmem:[#allocation14 + $0x30] sm:$0xff] }
  0xa3   : > { %1011 = vmatpush.bf16.msrb.mxu0 %v2835_v47 }
  0xa6   : > { %1012 = vmatmul.bf16.vlgmr.msrb.gmra.mxu0 %v3864_v48 }
 0x103   : > { %v749_v58 = vpop.f32.mrf.mxu0 }
 0x104   : > { %v766_v59 = vpack.c.bf16 %v749_v58, %v749_v58 }
 0x106   : > { %767 = vst [vmem:[#allocation2] sm:$0xf] %v766_v59  ;;  %v2844_v59 = vld [vmem:[#allocation14 + $0x8] sm:$0xff] }
 0x109   : > { %v762_v30 = vpop.f32.mrf.mxu1 }
 0x10a   : > { %v769_v31 = vadd.f32 %v768_v29, %v762_v30  ;;  %v2366_v30 = vor.u32 %v2825_v28, %v2365_v27  ;;  %v2865_v27 = vld [vmem:[#allocation18 + $0x20] sm:$0xff]  ;;  %v2864_v28 = vld [vmem:[#allocation18 + $0x18] sm:$0xff] }
 0x10b   : > { %v751_v1 = vpop.f32.mrf.mxu0 }
 0x10c   : > { %v770_v32 = vpack.c.bf16 %v769_v31, %v769_v31  ;;  %v2357_v31 = vld [vmem:[#allocation15 + $0x20] sm:$0xf] }
 0x10d   : > { %v921_v3 = vld [vmem:[#allocation2] sm:$0xf] }
 0x10e   : > { %1026 = vmatpush.bf16.xpose.msrb.mxu1 %v921_v3  ;;  %771 = vst [vmem:[#allocation3] sm:$0xf] %v770_v32  ;;  %v2823_v32 = vld [vmem:[#allocation15 + $0x24] sm:$0xf0] }
 0x111   : > { %v764_v33 = vpop.f32.mrf.mxu1 }
 0x115   : > { %v922_v34 = vld [vmem:[#allocation3] sm:$0xf] }
 0x116   : > { %v1050_v35 = vsel %vm1048_vm0, %v922_v34, 0  ;;  %1246 = vmatpush.bf16.msra.mxu1 %v2860_v21  ;;  %v2358_v34 = vor.u32 %v2823_v32, %v2357_v31  ;;  %v2862_v31 = vld [vmem:[#allocation18 + $0x8] sm:$0xff] }
 0x117   : > { %1059 = vmatpush.bf16.msrb.mxu3 %v1050_v35  ;;  %v2349_v35 = vld [vmem:[#allocation15 + $0x10] sm:$0xf] }
 0x118   : > { %v899_v47 = vpop.f32.mrf.mxu3 }
 0x119   : > { %v909_v52 = vadd.f32 %v908_v50, %v899_v47  ;;  %v2859_v47 = vld [vmem:[#allocation17 + $0x30] sm:$0xff] }
 0x11a   : > { %1247 = vmatpush.bf16.msra.mxu1 %v2859_v47  ;;  %v2899_v47 = vld [vmem:[#allocation20 + $0xec] sm:$0xf0] }
 0x11b   : > { %1115 = vmatpush.bf16.msra.mxu3 %v2850_v45 }
 0x11f   : > { %1116 = vmatpush.bf16.msra.mxu3 %v2849_v46 }
 0x120   : > { %v901_v53 = vpop.f32.mrf.mxu3 }
 0x121   : > { %v910_v55 = vadd.f32 %v908_v50, %v901_v53  ;;  %v2857_v50 = vld [vmem:[#allocation17 + $0x20] sm:$0xff]  ;;  %v2854_v53 = vld [vmem:[#allocation17 + $0x8] sm:$0xff] }
 0x123   : > { %v1013_v6 = vpop.f32.mrf.mxu0  ;;  %1117 = vmatpush.bf16.msra.mxu3 %v2848_v49  ;;  %v2941_v56 = vpack.c.bf16 %v910_v55, %v909_v52  ;;  %v2858_v49 = vld [vmem:[#allocation17 + $0x28] sm:$0xff]  ;;  %v2855_v52 = vld [vmem:[#allocation17 + $0x10] sm:$0xff] }
 0x124   : > { %v1014_v7 = vadd.f32 %v1013_v6, %v955_v5  ;;  %v1066_v5 = vperm.slane %v3867_v4, 2  ;;  %v920_v6 = vunpack.c.l.bf16 %v3864_v48  ;;  %v2382_v48 = vor.u32 %v2829_v20, %v2381_v19  ;;  %1248 = vmatpush.bf16.msra.mxu1 %v2858_v49  ;;  %v2897_v49 = vld [vmem:[#allocation20 + $0xe4] sm:$0xf] }
 0x125   : > { %2942 = vst [vmem:[#allocation5] sm:$0xff] %v2941_v56  }
 0x126   : > { %v1017_v8 = vmul.f32 0.088388346, %v1014_v7  ;;  %878 = vmatpush.bf16.msra.mxu2 %v2382_v48 }
 0x127   : > { %1118 = vmatpush.bf16.msra.mxu3 %v2847_v51  ;;  %v2856_v51 = vld [vmem:[#allocation17 + $0x18] sm:$0xff] }
 0x128   : > { %v1018_v9 = vpack.c.bf16 %v1017_v8, %v1017_v8  ;;  %1249 = vmatpush.bf16.msra.mxu1 %v2857_v50 }
 0x12a   : > { %1027 = vmatmul.bf16.vlgmr.msrb.gmra.mxu1 %v1018_v9  ;;  %879 = vmatpush.bf16.msra.mxu2 %v2374_v26  ;;  %v2866_v26 = vld [vmem:[#allocation18 + $0x28] sm:$0xff] }
 0x12b   : > { %v1015_v10 = vpop.f32.mrf.mxu0  ;;  %1119 = vmatpush.bf16.msra.mxu3 %v2846_v54  ;;  %v2853_v54 = vld [vmem:[#allocation17] sm:$0xff] }
 0x12c   : > { %v2852_v60 = vld [vmem:[#allocation5] sm:$0xff]  ;;  %1250 = vmatpush.bf16.msra.mxu1 %v2856_v51  ;;  %v2657_v51 = vld [vmem:[#allocation20 + $0xf0] sm:$0xf0] }
 0x12d   : > { %1309 = vmatpush.bf16.msra.mxu0 %v2852_v60 }
 0x12e   : > { %880 = vmatpush.bf16.msra.mxu2 %v2366_v30 }
 0x12f   : > { %1120 = vmatpush.bf16.msra.mxu3 %v2845_v57 }
 0x130   : > { %1251 = vmatpush.bf16.msra.mxu1 %v2855_v52  ;;  %v2663_v52 = vld [vmem:[#allocation20 + $0xe8] sm:$0xf] }
 0x132   : > { %881 = vmatpush.bf16.msra.mxu2 %v2358_v34 }
 0x133   : > { %1121 = vmatpush.bf16.msra.mxu3 %v2844_v59 }
 0x134   : > { %1252 = vmatpush.bf16.msra.mxu1 %v2854_v53  ;;  %v2900_v53 = vld [vmem:[#allocation20 + $0xf4] sm:$0xf0] }
 0x137   : > { %1122 = vmatpush.bf16.msra.mxu3 %v2843_v0  ;;  %v1156_v0 = vperm.slane %v3867_v4, 3 }
 0x138   : > { %1253 = vmatpush.bf16.msra.mxu1 %v2853_v54  ;;  %v2660_v54 = vor.u32 %v2897_v49, %v2657_v51  ;;  %v2879_v49 = vld [vmem:[#allocation20 + $0x4c] sm:$0xf0] }
 0x13a   : > { %1619 = vmatpush.bf16.msrb.mxu0 %v2660_v54  ;;  %v2880_v54 = vld [vmem:[#allocation20 + $0x54] sm:$0xf0] }
 0x1a7   : > { %v1028_v36 = vpop.f32.mrf.mxu1 }
 0x1a8   : > { %v1033_v37 = vsel %vm1032_vm1, %v1028_v36, -inf }
 0x1a9   : > { %1034 = vmax.xlane.f32.xlu0 %v1033_v37 }
 0x1af   : > { %v1030_v38 = vpop.f32.mrf.mxu1 }
 0x21c   : > { %v1035_v40 = vpop.xlane.xlu0 %1034 }
 0x21d   : > { %v1036_v41 = vsub.f32 %v1028_v36, %v1035_v40  ;;  %v2821_v36 = vld [vmem:[#allocation15 + $0x14] sm:$0xf0]  ;;  %v2341_v40 = vld [vmem:[#allocation15] sm:$0xf] }
 0x21e   : > { %v2350_v38 = vor.u32 %v2821_v36, %v2349_v35  ;;  %v2861_v35 = vld [vmem:[#allocation18] sm:$0xff] }
 0x21f   : > { %v1037_v42 = vmul.f32 1.442695, %v1036_v41  ;;  %v2819_v41 = vld [vmem:[#allocation15 + $0x4] sm:$0xf0] }
 0x220   : > { %882 = vmatpush.bf16.msra.mxu2 %v2350_v38 }
 0x221   : > { %3108 = vpow2.f32 %v1037_v42 }
 0x227   : > { %v3109_v43 = vpop.eup %3108 }
 0x228   : > { %v1039_v44 = vsel %vm1032_vm1, %v3109_v43, 0.0 }
 0x229   : > { %1040 = vadd.xlane.f32.xlu0 %v1039_v44  ;;  %v2342_v44 = vor.u32 %v2819_v41, %v2341_v40  ;;  %v1316_v41 = vperm.slane %v3867_v4, 7 }
 0x22b   : > { %883 = vmatpush.bf16.msra.mxu2 %v2342_v44 }
 0x22e   : > { %884 = vmatmul.bf16.vlgmr.msra.gmra.mxu2 %v3873_v39 }
 0x29c   : > { %v1041_v58 = vpop.xlane.xlu0 %1040 }
 0x29d   : > { %3110 = vrcp.f32 %v1041_v58 }
 0x29e   : > { %3112 = vrcp.f32 %v3585_v11  ;;  %v1197_v11 = vperm.slane %v3867_v4, 6 }
 0x2a3   : > { %v3111_v61 = vpop.eup %3110 }
 0x2a4   : > { %v1043_v62 = vmul.f32 %v3111_v61, %v3109_v43  ;;  %v3113_v18 = vpop.eup %3112 }
 0x2a5   : > { %v1132_v22 = vmul.f32 128.0, %v3113_v18  ;;  %vm1136_vm2 = vweird.f32 %v3113_v18 }
 0x2a6   : > { %v1044_v63 = vpack.c.bf16 %v1043_v62, %v1043_v62 }
 0x2a7   : > { %v1133_v25 = vsub.f32 1.0, %v1132_v22 }
 0x2a8   : > { %2435 = vmatmul.msk.bf16.vlgmr.msrb.gmra.mxu3 %vm1032_vm1, %v1044_v63 }
 0x2a9   : > { %v1134_v29 = vmul.f32 %v3113_v18, %v1133_v25  ;;  %v2867_v25 = vld [vmem:[#allocation18 + $0x30] sm:$0xff] }
 0x2ab   : > { %v1135_v33 = vadd.f32 %v3113_v18, %v1134_v29  ;;  %v2863_v29 = vld [vmem:[#allocation18 + $0x10] sm:$0xff] }
 0x2ad   : > { %v3881_v37 = vsel %vm1136_vm2, %v3113_v18, %v1135_v33 }
 0x2b1   : > { %v885_v62 = vpop.f32.mrf.mxu2 }
 0x32b   : > { %v1061_v1 = vpop.f32.mrf.mxu3 }
 0x32c   : > { %v1065_v2 = vpack.c.bf16 %v1061_v1, %v1061_v1 }
 0x32e   : > { %1123 = vmatmul.bf16.vlgmr.msra.gmra.mxu3 %v1065_v2 }
 0x333   : > { %v1063_v3 = vpop.f32.mrf.mxu3 }
 0x334   : > { %v1158_v3 = vperm.slane %v3867_v4, 4 }
 0x3b1   : > { %v1124_v7 = vpop.f32.mrf.mxu3 }
 0x3b2   : > { %v1125_v8 = vadd.f32 %v1124_v7, %v1066_v5 }
 0x3b4   : > { %v1128_v9 = vadd.f32 %v1125_v8, %v920_v6  ;;  %v887_v6 = vpop.f32.mrf.mxu2 }
 0x3b5   : > { %v2936_v8 = vpack.c.bf16 %v887_v6, %v885_v62  ;;  %v2895_v62 = vld [vmem:[#allocation20 + $0xcc] sm:$0xf0] }
 0x3b6   : > { %1129 = vadd.xlane.f32.xlu1 %v1128_v9 }
 0x3b7   : > { %2937 = vst [vmem:[#allocation4] sm:$0xff] %v2936_v8   ;;  %v2649_v8 = vld [vmem:[#allocation20 + $0xd8] sm:$0xf0] }
 0x3b9   : > { %v1126_v10 = vpop.f32.mrf.mxu3 }
 0x3be   : > { %v2851_v10 = vld [vmem:[#allocation4] sm:$0xff] }
 0x3bf   : > { %1274 = vmatpush.bf16.xpose.msrb.mxu2 %v2851_v10  ;;  %v2623_v10 = vld [vmem:[#allocation20 + $0xa0] sm:$0xf] }
 0x3c7   : > { %1365 = vmatpush.bf16.msra.mxu2 %v2868_v24 }
 0x3cb   : > { %1366 = vmatpush.bf16.msra.mxu2 %v2867_v25  ;;  %v2609_v25 = vld [vmem:[#allocation20 + $0x90] sm:$0xf0] }
 0x3cf   : > { %1367 = vmatpush.bf16.msra.mxu2 %v2866_v26  ;;  %v2615_v26 = vld [vmem:[#allocation20 + $0x88] sm:$0xf] }
 0x3d3   : > { %1368 = vmatpush.bf16.msra.mxu2 %v2865_v27  ;;  %v2888_v27 = vld [vmem:[#allocation20 + $0x94] sm:$0xf0] }
 0x3d7   : > { %1369 = vmatpush.bf16.msra.mxu2 %v2864_v28 }
 0x3db   : > { %1370 = vmatpush.bf16.msra.mxu2 %v2863_v29  ;;  %v2616_v29 = vor.u32 %v2888_v27, %v2615_v26 }
 0x3df   : > { %1371 = vmatpush.bf16.msra.mxu2 %v2862_v31  ;;  %v2617_v31 = vld [vmem:[#allocation20 + $0x98] sm:$0xf0] }
 0x3e3   : > { %1372 = vmatpush.bf16.msra.mxu2 %v2861_v35  ;;  %v2881_v35 = vld [vmem:[#allocation20 + $0x64] sm:$0xf] }
 0x429   : > { %v1130_v42 = vpop.xlane.xlu1 %1129 }
 0x42a   : > { %v1138_v43 = vmul.f32 %v3881_v37, %v1130_v42 }
 0x42c   : > { %v1139_v45 = vsub.f32 %v1128_v9, %v1138_v43 }
 0x42e   : > { %v1140_v46 = vmul.f32 %v1139_v45, %v1139_v45 }
 0x430   : > { %1141 = vadd.xlane.f32.xlu1 %v1140_v46  ;;  %v2655_v46 = vld [vmem:[#allocation20 + $0xe0] sm:$0xf] }
 0x431   : > { %v2656_v50 = vor.u32 %v2899_v47, %v2655_v46  ;;  %v2575_v47 = vld [vmem:[#allocation20 + $0x40] sm:$0xf] }
 0x432   : > { %v2576_v51 = vor.u32 %v2879_v49, %v2575_v47  ;;  %v2913_v47 = vld [vmem:[#allocation21 + $0x60] sm:$0xff] }
 0x433   : > { %1606 = vmatpush.bf16.msrb.mxu3 %v2656_v50  ;;  %v2877_v50 = vld [vmem:[#allocation20 + $0x44] sm:$0xf] }
 0x434   : > { %v2921_v49 = vld [vmem:[#allocation21 + $0xa0] sm:$0xff] }
 0x4a3   : > { %v1142_v55 = vpop.xlane.xlu1 %1141 }
 0x4a4   : > { %v1143_v56 = vmul.f32 %v1142_v55, %v3881_v37  ;;  %v2664_v55 = vor.u32 %v2900_v53, %v2663_v52  ;;  %v2577_v52 = vld [vmem:[#allocation20 + $0x50] sm:$0xf0]  ;;  %v2583_v53 = vld [vmem:[#allocation20 + $0x48] sm:$0xf] }
 0x4a6   : > { %v1144_v57 = vadd.f32 1e-05, %v1143_v56  ;;  %v2898_v56 = vld [vmem:[#allocation20 + $0xec] sm:$0xf]  ;;  %1632 = vmatpush.bf16.msrb.mxu1 %v2664_v55  ;;  %v2580_v55 = vor.u32 %v2877_v50, %v2577_v52  ;;  %v2912_v52 = vld [vmem:[#allocation21 + $0x58] sm:$0xff] }
 0x4a7   : > { %v2906_v50 = vld [vmem:[#allocation21 + $0x28] sm:$0xff] }
 0x4a8   : > { %3114 = vrsqrt.f32 %v1144_v57  ;;  %vm1151_vm4 = vweird.f32 %v1144_v57 }
 0x4ae   : > { %v3115_v39 = vpop.eup %3114 }
 0x4af   : > { %v1146_v58 = vmul.f32 %v3115_v39, %v1144_v57  ;;  %vm1152_vm3 = vweird.f32 %v3115_v39  ;;  %v2665_v57 = vld [vmem:[#allocation20 + $0xf8] sm:$0xf0] }
 0x4b0   : > { %vm1153_vm5 = vmor %vm1151_vm4, %vm1152_vm3 }
 0x4b1   : > { %v1147_v59 = vmul.f32 %v3115_v39, %v1146_v58 }
 0x4b3   : > { %v1148_v60 = vmul.f32 0.5, %v1147_v59 }
 0x4b5   : > { %v1149_v61 = vsub.f32 1.5, %v1148_v60 }
 0x4b7   : > { %v1150_v63 = vmul.f32 %v3115_v39, %v1149_v61  ;;  %v2639_v61 = vld [vmem:[#allocation20 + $0xc0] sm:$0xf] }
 0x4b9   : > { %v1154_v1 = vsel %vm1153_vm5, %v3115_v39, %v1150_v63  ;;  %v2668_v39 = vor.u32 %v2898_v56, %v2665_v57  ;;  %v2893_v63 = vld [vmem:[#allocation20 + $0xc4] sm:$0xf]  ;;  %v2584_v56 = vor.u32 %v2880_v54, %v2583_v53  ;;  %v2878_v57 = vld [vmem:[#allocation20 + $0x4c] sm:$0xf]  ;;  %v2920_v53 = vld [vmem:[#allocation21 + $0x98] sm:$0xff] }
 0x4ba   : > { %v1155_v2 = vmul.f32 %v1154_v1, %v1139_v45  ;;  %v2641_v1 = vld [vmem:[#allocation20 + $0xd0] sm:$0xf0]  ;;  %v2905_v54 = vld [vmem:[#allocation21 + $0x20] sm:$0xff] }
 0x4bc   : > { %v1157_v5 = vmul.f32 %v1156_v0, %v1155_v2  ;;  %v2640_v0 = vor.u32 %v2895_v62, %v2639_v61  ;;  %v2647_v2 = vld [vmem:[#allocation20 + $0xc8] sm:$0xf]  ;;  %v2873_v61 = vld [vmem:[#allocation20 + $0x24] sm:$0xf] }
 0x4be   : > { %v1159_v7 = vadd.f32 %v1158_v3, %v1157_v5  ;;  %v2896_v3 = vld [vmem:[#allocation20 + $0xd4] sm:$0xf0]  ;;  %v2644_v5 = vor.u32 %v2893_v63, %v2641_v1  ;;  %1607 = vmatpush.bf16.msrb.mxu3 %v2640_v0  ;;  %v2561_v63 = vld [vmem:[#allocation20 + $0x30] sm:$0xf0]  ;;  %v2567_v0 = vld [vmem:[#allocation20 + $0x28] sm:$0xf] }
 0x4bf   : > { %v2648_v6 = vor.u32 %v2896_v3, %v2647_v2  ;;  %v2876_v1 = vld [vmem:[#allocation20 + $0x34] sm:$0xf0]  ;;  %v2564_v2 = vor.u32 %v2873_v61, %v2561_v63  ;;  %v2903_v61 = vld [vmem:[#allocation21 + $0x10] sm:$0xff]  ;;  %v2909_v63 = vld [vmem:[#allocation21 + $0x40] sm:$0xff] }
 0x4c0   : > { %v1196_v9 = vpack.c.bf16 %v1159_v7, %v1159_v7  ;;  %1620 = vmatpush.bf16.msrb.mxu0 %v2644_v5  ;;  %v2568_v3 = vor.u32 %v2876_v1, %v2567_v0  ;;  %v2874_v5 = vld [vmem:[#allocation20 + $0x2c] sm:$0xf]  ;;  %v2917_v0 = vld [vmem:[#allocation21 + $0x80] sm:$0xff] }
 0x4c1   : > { %1633 = vmatpush.bf16.msrb.mxu1 %v2648_v6  ;;  %v2569_v6 = vld [vmem:[#allocation20 + $0x38] sm:$0xf0]  ;;  %v2902_v1 = vld [vmem:[#allocation21 + $0x8] sm:$0xff] }
 0x4c2   : > { %1254 = vmatmul.bf16.vlgmr.msra.gmra.mxu1 %v1196_v9 }
 0x53f   : > { %v1255_v12 = vpop.f32.mrf.mxu1 }
 0x540   : > { %v1256_v13 = vadd.f32 %v1255_v12, %v1197_v11  ;;  %v2891_v11 = vld [vmem:[#allocation20 + $0xac] sm:$0xf0]  ;;  %v2889_v12 = vld [vmem:[#allocation20 + $0xa4] sm:$0xf] }
 0x542   : > { %v1259_v14 = vmul.f32 0.088388346, %v1256_v13  ;;  %v2624_v13 = vor.u32 %v2891_v11, %v2623_v10  ;;  %v2869_v10 = vld [vmem:[#allocation20 + $0x4] sm:$0xf]  ;;  %v2545_v11 = vld [vmem:[#allocation20 + $0x10] sm:$0xf0] }
 0x544   : > { %v1260_v15 = vpack.c.bf16 %v1259_v14, %v1259_v14  ;;  %v2625_v14 = vld [vmem:[#allocation20 + $0xb0] sm:$0xf0]  ;;  %1608 = vmatpush.bf16.msrb.mxu3 %v2624_v13  ;;  %v2548_v13 = vor.u32 %v2869_v10, %v2545_v11 }
 0x546   : > { %1275 = vmatmul.bf16.vlgmr.msrb.gmra.mxu2 %v1260_v15  ;;  %v2631_v15 = vld [vmem:[#allocation20 + $0xa8] sm:$0xf] }
 0x547   : > { %v1257_v16 = vpop.f32.mrf.mxu1  ;;  %1645 = vmatpush.bf16.msrb.mxu2 %v2668_v39  ;;  %v2585_v39 = vld [vmem:[#allocation20 + $0x58] sm:$0xf0] }
 0x548   : > { %v2892_v16 = vld [vmem:[#allocation20 + $0xb4] sm:$0xf0] }
 0x5c9   : > { %v1276_v17 = vpop.f32.mrf.mxu2 }
 0x5ca   : > { %v1281_v18 = vsel %vm1280_vm6, %v1276_v17, -inf }
 0x5cb   : > { %1282 = vmax.xlane.f32.xlu2 %v1281_v18  ;;  %v2632_v18 = vor.u32 %v2892_v16, %v2631_v15  ;;  %v2872_v15 = vld [vmem:[#allocation20 + $0x14] sm:$0xf0]  ;;  %v2870_v16 = vld [vmem:[#allocation20 + $0xc] sm:$0xf] }
 0x5cd   : > { %1634 = vmatpush.bf16.msrb.mxu1 %v2632_v18  ;;  %v2553_v18 = vld [vmem:[#allocation20 + $0x18] sm:$0xf0] }
 0x5d1   : > { %v1278_v19 = vpop.f32.mrf.mxu2  ;;  %1635 = vmatpush.bf16.msrb.mxu1 %v2616_v29 }
 0x5d2   : > { %v2890_v19 = vld [vmem:[#allocation20 + $0xac] sm:$0xf] }
 0x63e   : > { %v1283_v20 = vpop.xlane.xlu2 %1282 }
 0x63f   : > { %v1284_v21 = vsub.f32 %v1276_v17, %v1283_v20  ;;  %v2628_v17 = vor.u32 %v2889_v12, %v2625_v14  ;;  %v2633_v20 = vld [vmem:[#allocation20 + $0xb8] sm:$0xf0]  ;;  %v2551_v14 = vld [vmem:[#allocation20 + $0x8] sm:$0xf] }
 0x641   : > { %v1285_v22 = vmul.f32 1.442695, %v1284_v21  ;;  %v2636_v21 = vor.u32 %v2890_v19, %v2633_v20  ;;  %1621 = vmatpush.bf16.msrb.mxu0 %v2628_v17  ;;  %v2552_v17 = vor.u32 %v2872_v15, %v2551_v14  ;;  %v2556_v19 = vor.u32 %v2870_v16, %v2553_v18 }
 0x643   : > { %3116 = vpow2.f32 %v1285_v22  ;;  %v2607_v22 = vld [vmem:[#allocation20 + $0x80] sm:$0xf] }
 0x649   : > { %v3117_v48 = vpop.eup %3116 }
 0x64a   : > { %v1287_v23 = vsel %vm1280_vm6, %v3117_v48, 0.0 }
 0x64b   : > { %1288 = vadd.xlane.f32.xlu2 %v1287_v23  ;;  %v2885_v23 = vld [vmem:[#allocation20 + $0x84] sm:$0xf] }
 0x64c   : > { %v2612_v28 = vor.u32 %v2885_v23, %v2609_v25  ;;  %v2915_v23 = vld [vmem:[#allocation21 + $0x70] sm:$0xff] }
 0x64e   : > { %1622 = vmatpush.bf16.msrb.mxu0 %v2612_v28 }
 0x6be   : > { %v1289_v30 = vpop.xlane.xlu2 %1288 }
 0x6bf   : > { %3118 = vrcp.f32 %v1289_v30  ;;  %v2886_v30 = vld [vmem:[#allocation20 + $0x8c] sm:$0xf] }
 0x6c5   : > { %v3119_v32 = vpop.eup %3118 }
 0x6c6   : > { %v1291_v33 = vmul.f32 %v3119_v32, %v3117_v48  ;;  %v2887_v48 = vld [vmem:[#allocation20 + $0x8c] sm:$0xf0]  ;;  %v2620_v32 = vor.u32 %v2886_v30, %v2617_v31  ;;  %v3899_v31 = vld [vmem:[#allocation23 + $0x8] sm:$0xff] }
 0x6c7   : > { %v2608_v24 = vor.u32 %v2887_v48, %v2607_v22  ;;  %v2924_v22 = vld [vmem:[#allocation21 + $0xb8] sm:$0xff] }
 0x6c8   : > { %v1292_v34 = vpack.c.bf16 %v1291_v33, %v1291_v33  ;;  %v2591_v33 = vld [vmem:[#allocation20 + $0x60] sm:$0xf] }
 0x6c9   : > { %1609 = vmatpush.bf16.msrb.mxu3 %v2608_v24  ;;  %v2923_v24 = vld [vmem:[#allocation21 + $0xb0] sm:$0xff] }
 0x6ca   : > { %2508 = vmatmul.msk.bf16.vlgmr.msra.gmra.mxu0 %vm1280_vm6, %v1292_v34  ;;  %v2883_v34 = vld [vmem:[#allocation20 + $0x6c] sm:$0xf0] }
 0x747   : > { %v1311_v36 = vpop.f32.mrf.mxu0 }
 0x748   : > { %v1315_v38 = vpack.c.bf16 %v1311_v36, %v1311_v36  ;;  %v2592_v36 = vor.u32 %v2883_v34, %v2591_v33  ;;  %v1399_v33 = vperm.slane %v3899_v31, 0 }
 0x74a   : > { %1373 = vmatmul.bf16.vlgmr.msra.gmra.mxu2 %v1315_v38  ;;  %v2593_v38 = vld [vmem:[#allocation20 + $0x70] sm:$0xf0]  ;;  %1610 = vmatpush.bf16.msrb.mxu3 %v2592_v36  ;;  %v1401_v36 = vperm.slane %v3899_v31, 1 }
 0x74e   : > { %1611 = vmatpush.bf16.msrb.mxu3 %v2576_v51  ;;  %v2930_v51 = vld [vmem:[#allocation21 + $0xe8] sm:$0xff] }
 0x74f   : > { %v1313_v40 = vpop.f32.mrf.mxu0 }
 0x750   : > { %v2599_v40 = vld [vmem:[#allocation20 + $0x68] sm:$0xf] }
 0x7cd   : > { %v1374_v42 = vpop.f32.mrf.mxu2 }
 0x7ce   : > { %v1375_v43 = vadd.f32 %v1374_v42, %v1316_v41  ;;  %v2884_v41 = vld [vmem:[#allocation20 + $0x74] sm:$0xf0]  ;;  %v2596_v42 = vor.u32 %v2881_v35, %v2593_v38 }
 0x7d0   : > { %v1378_v44 = vadd.f32 %v1375_v43, %v1159_v7  ;;  %v2894_v7 = vld [vmem:[#allocation20 + $0xcc] sm:$0xf]  ;;  %v2600_v43 = vor.u32 %v2884_v41, %v2599_v40  ;;  %1623 = vmatpush.bf16.msrb.mxu0 %v2596_v42  ;;  %v2908_v42 = vld [vmem:[#allocation21 + $0x38] sm:$0xff] }
 0x7d1   : > { %v2652_v9 = vor.u32 %v2894_v7, %v2649_v8  ;;  %v2543_v7 = vld [vmem:[#allocation20] sm:$0xf]  ;;  %v2572_v8 = vor.u32 %v2874_v5, %v2569_v6 }
 0x7d2   : > { %1379 = vadd.xlane.f32.xlu0 %v1378_v44  ;;  %1636 = vmatpush.bf16.msrb.mxu1 %v2600_v43  ;;  %v2932_v43 = vld [vmem:[#allocation21 + $0xf8] sm:$0xff]  ;;  %v2901_v5 = vld [vmem:[#allocation21] sm:$0xff] }
 0x7d3   : > { %1646 = vmatpush.bf16.msrb.mxu2 %v2652_v9  ;;  %v2871_v9 = vld [vmem:[#allocation20 + $0xc] sm:$0xf0]  ;;  %v2925_v6 = vld [vmem:[#allocation21 + $0xc0] sm:$0xff] }
 0x7d4   : > { %1624 = vmatpush.bf16.msrb.mxu0 %v2580_v55  ;;  %v2544_v12 = vor.u32 %v2871_v9, %v2543_v7  ;;  %v2929_v55 = vld [vmem:[#allocation21 + $0xe0] sm:$0xff] }
 0x7d5   : > { %v1376_v45 = vpop.f32.mrf.mxu2 }
 0x7d6   : > { %v2601_v45 = vld [vmem:[#allocation20 + $0x78] sm:$0xf0]  ;;  %1637 = vmatpush.bf16.msrb.mxu1 %v2584_v56  ;;  %v2911_v56 = vld [vmem:[#allocation21 + $0x50] sm:$0xff] }
 0x7d7   : > { %1647 = vmatpush.bf16.msrb.mxu2 %v2636_v21  ;;  %v2916_v21 = vld [vmem:[#allocation21 + $0x78] sm:$0xff] }
 0x7d8   : > { %1625 = vmatpush.bf16.msrb.mxu0 %v2564_v2  ;;  %v2926_v2 = vld [vmem:[#allocation21 + $0xc8] sm:$0xff] }
 0x7da   : > { %1638 = vmatpush.bf16.msrb.mxu1 %v2568_v3  ;;  %v1403_v3 = vld [vmem:[%s4008_s15] sm:$0xf] }
 0x7db   : > { %1648 = vmatpush.bf16.msrb.mxu2 %v2620_v32  ;;  %v1439_v7 = vperm.slane %v1403_v3, 1  ;;  %v1438_v14 = vperm.slane %v1403_v3, 0  ;;  %v1441_v16 = vperm.slane %v1403_v3, 3 }
 0x7dc   : > { %1626 = vmatpush.bf16.msrb.mxu0 %v2548_v13 }
 0x7de   : > { %1639 = vmatpush.bf16.msrb.mxu1 %v2552_v17 }
 0x7e0   : > { %1968 = vmatpush.bf16.msra.mxu0 %v2916_v21 }
 0x7e2   : > { %1981 = vmatpush.bf16.msra.mxu1 %v2924_v22 }
 0x7e4   : > { %1969 = vmatpush.bf16.msra.mxu0 %v2915_v23 }
 0x7e6   : > { %1982 = vmatpush.bf16.msra.mxu1 %v2923_v24 }
 0x845   : > { %v1380_v4 = vpop.xlane.xlu0 %1379 }
 0x846   : > { %v1381_v58 = vmul.f32 %v1380_v4, %v3881_v37  ;;  %v2588_v4 = vor.u32 %v2878_v57, %v2585_v39  ;;  %v2919_v57 = vld [vmem:[#allocation21 + $0x90] sm:$0xff]  ;;  %v2904_v39 = vld [vmem:[#allocation21 + $0x18] sm:$0xff] }
 0x848   : > { %v3894_v59 = vsub.f32 %v1378_v44, %v1381_v58  ;;  %v2882_v44 = vld [vmem:[#allocation20 + $0x6c] sm:$0xf]  ;;  %v2559_v58 = vld [vmem:[#allocation20 + $0x20] sm:$0xf] }
 0x849   : > { %v2604_v46 = vor.u32 %v2882_v44, %v2601_v45  ;;  %v2914_v44 = vld [vmem:[#allocation21 + $0x68] sm:$0xff] }
 0x84a   : > { %v1383_v60 = vmul.f32 %v3894_v59, %v3894_v59  ;;  %v2922_v45 = vld [vmem:[#allocation21 + $0xa8] sm:$0xff]  ;;  %1970 = vmatpush.bf16.msra.mxu0 %v2914_v44 }
 0x84b   : > { %1649 = vmatpush.bf16.msrb.mxu2 %v2604_v46  ;;  %1983 = vmatpush.bf16.msra.mxu1 %v2922_v45  ;;  %v2931_v46 = vld [vmem:[#allocation21 + $0xf0] sm:$0xff] }
 0x84c   : > { %1384 = vadd.xlane.f32.xlu1 %v1383_v60  ;;  %v2875_v60 = vld [vmem:[#allocation20 + $0x2c] sm:$0xf0] }
 0x84d   : > { %v2560_v62 = vor.u32 %v2875_v60, %v2559_v58  ;;  %v2910_v58 = vld [vmem:[#allocation21 + $0x48] sm:$0xff] }
 0x84e   : > { %1971 = vmatpush.bf16.msra.mxu0 %v2913_v47  ;;  %v2918_v60 = vld [vmem:[#allocation21 + $0x88] sm:$0xff] }
 0x84f   : > { %1650 = vmatpush.bf16.msrb.mxu2 %v2588_v4  ;;  %1612 = vmatpush.bf16.msrb.mxu3 %v2560_v62  ;;  %v2928_v4 = vld [vmem:[#allocation21 + $0xd8] sm:$0xff]  ;;  %v2927_v62 = vld [vmem:[#allocation21 + $0xd0] sm:$0xff] }
 0x850   : > { %1984 = vmatpush.bf16.msra.mxu1 %v2921_v49 }
 0x852   : > { %1972 = vmatpush.bf16.msra.mxu0 %v2912_v52 }
 0x853   : > { %1651 = vmatpush.bf16.msrb.mxu2 %v2572_v8  ;;  %1613 = vmatpush.bf16.msrb.mxu3 %v2544_v12  ;;  %v1440_v8 = vperm.slane %v1403_v3, 2 }
 0x854   : > { %1985 = vmatpush.bf16.msra.mxu1 %v2920_v53 }
 0x856   : > { %1973 = vmatpush.bf16.msra.mxu0 %v2911_v56 }
 0x857   : > { %1652 = vmatpush.bf16.msrb.mxu2 %v2556_v19  ;;  %1955 = vmatpush.bf16.msra.mxu3 %v2908_v42 }
 0x858   : > { %1986 = vmatpush.bf16.msra.mxu1 %v2919_v57 }
 0x85a   : > { %1974 = vmatpush.bf16.msra.mxu0 %v2910_v58 }
 0x85b   : > { %1994 = vmatpush.bf16.msra.mxu2 %v2932_v43 }
 0x85c   : > { %1987 = vmatpush.bf16.msra.mxu1 %v2918_v60 }
 0x85e   : > { %1975 = vmatpush.bf16.msra.mxu0 %v2909_v63 }
 0x85f   : > { %1995 = vmatpush.bf16.msra.mxu2 %v2931_v46 }
 0x860   : > { %1988 = vmatpush.bf16.msra.mxu1 %v2917_v0 }
 0x863   : > { %1996 = vmatpush.bf16.msra.mxu2 %v2930_v51 }
 0x867   : > { %1997 = vmatpush.bf16.msra.mxu2 %v2929_v55 }
 0x86b   : > { %1998 = vmatpush.bf16.msra.mxu2 %v2928_v4 }
 0x86f   : > { %1999 = vmatpush.bf16.msra.mxu2 %v2927_v62 }
 0x873   : > { %2000 = vmatpush.bf16.msra.mxu2 %v2926_v2 }
 0x877   : > { %2001 = vmatpush.bf16.msra.mxu2 %v2925_v6  ;;  %v1762_v6 = vperm.slane %v3899_v31, 2 }
 0x8bf   : > { %v1385_v20 = vpop.xlane.xlu1 %1384 }
 0x8c0   : > { %v1386_v48 = vmul.f32 %v1385_v20, %v3881_v37 }
 0x8c2   : > { %v1387_v25 = vadd.f32 1e-05, %v1386_v48 }
 0x8c4   : > { %3120 = vrsqrt.f32 %v1387_v25  ;;  %vm1394_vm8 = vweird.f32 %v1387_v25 }
 0x8ca   : > { %v3121_v26 = vpop.eup %3120 }
 0x8cb   : > { %v1389_v27 = vmul.f32 %v3121_v26, %v1387_v25  ;;  %vm1395_vm7 = vweird.f32 %v3121_v26 }
 0x8cc   : > { %vm1396_vm9 = vmor %vm1394_vm8, %vm1395_vm7 }
 0x8cd   : > { %v1390_v28 = vmul.f32 %v3121_v26, %v1389_v27 }
 0x8cf   : > { %v1391_v29 = vmul.f32 0.5, %v1390_v28 }
 0x8d1   : > { %v1392_v30 = vsub.f32 1.5, %v1391_v29 }
 0x8d3   : > { %v1393_v32 = vmul.f32 %v3121_v26, %v1392_v30 }
 0x8d5   : > { %v1397_v34 = vsel %vm1396_vm9, %v3121_v26, %v1393_v32 }
 0x8d6   : > { %v1398_v35 = vmul.f32 %v1397_v34, %v3894_v59  ;;  %v2907_v59 = vld [vmem:[#allocation21 + $0x30] sm:$0xff] }
 0x8d7   : > { %1956 = vmatpush.bf16.msra.mxu3 %v2907_v59 }
 0x8d8   : > { %v1400_v38 = vmul.f32 %v1399_v33, %v1398_v35 }
 0x8da   : > { %v3904_v40 = vadd.f32 %v1401_v36, %v1400_v38 }
 0x8db   : > { %1957 = vmatpush.bf16.msra.mxu3 %v2906_v50 }
 0x8dc   : > { %v1404_v41 = vpack.c.bf16 %v3904_v40, %v3904_v40 }
 0x8de   : > { %1614 = vmatmul.bf16.vlgmr.msrb.gmra.mxu3 %v1404_v41  ;;  %1627 = vmatmul.bf16.vlgmr.msrb.gmra.mxu0 %v1404_v41 }
 0x8df   : > { %1640 = vmatmul.bf16.vlgmr.msrb.gmra.mxu1 %v1404_v41  ;;  %1653 = vmatmul.bf16.vlgmr.msrb.gmra.mxu2 %v1404_v41 }
 0x8e0   : > { %1958 = vmatpush.bf16.msra.mxu3 %v2905_v54 }
 0x8e4   : > { %1959 = vmatpush.bf16.msra.mxu3 %v2904_v39 }
 0x8e8   : > { %1960 = vmatpush.bf16.msra.mxu3 %v2903_v61 }
 0x8ec   : > { %1961 = vmatpush.bf16.msra.mxu3 %v2902_v1 }
 0x8f0   : > { %1962 = vmatpush.bf16.msra.mxu3 %v2901_v5 }
 0x95b   : > { %v1628_v9 = vpop.f32.mrf.mxu0 }
 0x95c   : > { %v1629_v10 = vadd.f32 %v1628_v9, %v1439_v7  ;;  %v1641_v11 = vpop.f32.mrf.mxu1 }
 0x95d   : > { %v1642_v12 = vadd.f32 %v1641_v11, %v1440_v8 }
 0x95e   : > { %v1663_v13 = vmul.f32 0.044715, %v1629_v10  ;;  %v1659_v47 = vmul.f32 0.5, %v1629_v10 }
 0x95f   : > { %v1664_v15 = vmul.f32 0.044715, %v1642_v12  ;;  %v1660_v50 = vmul.f32 0.5, %v1642_v12 }
 0x960   : > { %v1667_v17 = vmul.f32 %v1663_v13, %v1629_v10 }
 0x961   : > { %v1668_v18 = vmul.f32 %v1664_v15, %v1642_v12  ;;  %v1615_v19 = vpop.f32.mrf.mxu3 }
 0x962   : > { %v1671_v20 = vmul.f32 %v1667_v17, %v1629_v10  ;;  %v1616_v21 = vadd.f32 %v1615_v19, %v1438_v14  ;;  %v1654_v22 = vpop.f32.mrf.mxu2 }
 0x963   : > { %v1672_v48 = vmul.f32 %v1668_v18, %v1642_v12  ;;  %v1655_v23 = vadd.f32 %v1654_v22, %v1441_v16  ;;  %v1630_v24 = vpop.f32.mrf.mxu0 }
 0x964   : > { %v1662_v25 = vmul.f32 0.044715, %v1616_v21  ;;  %v1643_v26 = vpop.f32.mrf.mxu1  ;;  %v1675_v27 = vadd.f32 %v1671_v20, %v1629_v10  ;;  %v1658_v39 = vmul.f32 0.5, %v1616_v21 }
 0x965   : > { %v1665_v28 = vmul.f32 0.044715, %v1655_v23  ;;  %v1676_v29 = vadd.f32 %v1672_v48, %v1642_v12  ;;  %v1661_v58 = vmul.f32 0.5, %v1655_v23 }
 0x966   : > { %v1666_v30 = vmul.f32 %v1662_v25, %v1616_v21  ;;  %v1679_v32 = vmul.f32 0.7978846, %v1675_v27  ;;  %v2028_v27 = vperm.slane %v3899_v31, 3 }
 0x967   : > { %v1669_v33 = vmul.f32 %v1665_v28, %v1655_v23  ;;  %v1680_v34 = vmul.f32 0.7978846, %v1676_v29 }
 0x968   : > { %v1670_v35 = vmul.f32 %v1666_v30, %v1616_v21  ;;  %3122 = vtanh.f32 %v1679_v32 }
 0x969   : > { %v1673_v36 = vmul.f32 %v1669_v33, %v1655_v23  ;;  %v1617_v38 = vpop.f32.mrf.mxu3  ;;  %3124 = vtanh.f32 %v1680_v34 }
 0x96a   : > { %v1656_v41 = vpop.f32.mrf.mxu2  ;;  %v1674_v42 = vadd.f32 %v1670_v35, %v1616_v21 }
 0x96b   : > { %v1677_v43 = vadd.f32 %v1673_v36, %v1655_v23 }
 0x96c   : > { %v1678_v44 = vmul.f32 0.7978846, %v1674_v42 }
 0x96d   : > { %v1681_v45 = vmul.f32 0.7978846, %v1677_v43 }
 0x96e   : > { %v3123_v59 = vpop.eup %3122  ;;  %3126 = vtanh.f32 %v1678_v44 }
 0x96f   : > { %v3125_v46 = vpop.eup %3124  ;;  %v1687_v49 = vadd.f32 1.0, %v3123_v59  ;;  %3128 = vtanh.f32 %v1681_v45 }
 0x970   : > { %v1688_v51 = vadd.f32 1.0, %v3125_v46 }
 0x971   : > { %v1691_v52 = vmul.f32 %v1687_v49, %v1659_v47 }
 0x972   : > { %v1692_v53 = vmul.f32 %v1688_v51, %v1660_v50 }
 0x973   : > { %v1695_v54 = vpack.c.bf16 %v1691_v52, %v1691_v52 }
 0x974   : > { %v3127_v55 = vpop.eup %3126  ;;  %v1696_v56 = vpack.c.bf16 %v1692_v53, %v1692_v53 }
 0x975   : > { %v3129_v57 = vpop.eup %3128  ;;  %1976 = vmatmul.bf16.vlgmr.msra.gmra.mxu0 %v1695_v54  ;;  %v1686_v4 = vadd.f32 1.0, %v3127_v55 }
 0x976   : > { %1989 = vmatmul.bf16.vlgmr.msra.gmra.mxu1 %v1696_v56  ;;  %v1689_v60 = vadd.f32 1.0, %v3129_v57 }
 0x977   : > { %v1690_v61 = vmul.f32 %v1686_v4, %v1658_v39 }
 0x978   : > { %v1693_v62 = vmul.f32 %v1689_v60, %v1661_v58 }
 0x979   : > { %v1694_v63 = vpack.c.bf16 %v1690_v61, %v1690_v61 }
 0x97a   : > { %v1697_v0 = vpack.c.bf16 %v1693_v62, %v1693_v62 }
 0x97b   : > { %1963 = vmatmul.bf16.vlgmr.msra.gmra.mxu3 %v1694_v63 }
 0x97c   : > { %2002 = vmatmul.bf16.vlgmr.msra.gmra.mxu2 %v1697_v0 }
 0x9f2   : > { %v1977_v1 = vpop.f32.mrf.mxu0 }
 0x9f3   : > { %v1990_v2 = vpop.f32.mrf.mxu1 }
 0x9fa   : > { %v1979_v3 = vpop.f32.mrf.mxu0 }
 0x9fb   : > { %v1992_v5 = vpop.f32.mrf.mxu1 }
 0x9fe   : > { %v1964_v7 = vpop.f32.mrf.mxu3 }
 0x9ff   : > { %v1965_v8 = vadd.f32 %v1964_v7, %v1762_v6  ;;  %v2003_v9 = vpop.f32.mrf.mxu2 }
 0xa01   : > { %v1978_v10 = vadd.f32 %v1977_v1, %v1965_v8 }
 0xa03   : > { %v1991_v11 = vadd.f32 %v1990_v2, %v1978_v10 }
 0xa05   : > { %v2004_v12 = vadd.f32 %v2003_v9, %v1991_v11 }
 0xa06   : > { %v1966_v13 = vpop.f32.mrf.mxu3 }
 0xa07   : > { %v2005_v14 = vpop.f32.mrf.mxu2  ;;  %v2007_v15 = vadd.f32 %v2004_v12, %v3904_v40 }
 0xa09   : > { %2008 = vadd.xlane.f32.xlu2 %v2007_v15 }
 0xa7c   : > { %v2009_v16 = vpop.xlane.xlu2 %2008 }
 0xa7d   : > { %v2010_v17 = vmul.f32 %v2009_v16, %v3881_v37 }
 0xa7f   : > { %v2011_v18 = vsub.f32 %v2007_v15, %v2010_v17 }
 0xa81   : > { %v2012_v19 = vmul.f32 %v2011_v18, %v2011_v18 }
 0xa83   : > { %2013 = vadd.xlane.f32.xlu0 %v2012_v19 }
 0xaf6   : > { %v2014_v20 = vpop.xlane.xlu0 %2013 }
 0xaf7   : > { %v2015_v21 = vmul.f32 %v2014_v20, %v3881_v37  ;;  %v2030_v37 = vperm.slane %v3899_v31, 4 }
 0xaf9   : > { %v2016_v22 = vadd.f32 1e-05, %v2015_v21 }
 0xafb   : > { %3130 = vrsqrt.f32 %v2016_v22  ;;  %vm2023_vm11 = vweird.f32 %v2016_v22 }
 0xb01   : > { %v3131_v48 = vpop.eup %3130 }
 0xb02   : > { %v2018_v23 = vmul.f32 %v3131_v48, %v2016_v22  ;;  %vm2024_vm10 = vweird.f32 %v3131_v48 }
 0xb03   : > { %vm2025_vm12 = vmor %vm2023_vm11, %vm2024_vm10 }
 0xb04   : > { %v2019_v24 = vmul.f32 %v3131_v48, %v2018_v23 }
 0xb06   : > { %v2020_v25 = vmul.f32 0.5, %v2019_v24 }
 0xb08   : > { %v2021_v26 = vsub.f32 1.5, %v2020_v25 }
 0xb0a   : > { %v2022_v40 = vmul.f32 %v3131_v48, %v2021_v26 }
 0xb0c   : > { %v2026_v28 = vsel %vm2025_vm12, %v3131_v48, %v2022_v40 }
 0xb0d   : > { %v2027_v29 = vmul.f32 %v2026_v28, %v2011_v18 }
 0xb0f   : > { %v2029_v30 = vmul.f32 %v2028_v27, %v2027_v29 }
 0xb11   : > { %v2031_v32 = vadd.f32 %v2030_v37, %v2029_v30 }
 0xb13   : > { %v2032_v33 = vpack.c.bf16 %v2031_v32, %v2031_v32 }
 0xb15   : > { %2033 = vst [vmem:[%s634_s20] sm:$0xf] %v2032_v33 }
 0xb16   : > { %3489 = shalt.err (!%p3486_p13)
}
 0xb17   : > { %2983 = dma.vmem_to_hbm [thread:$0]  (%p3792_p4), %s2049_s30, 64, %s2051_s29, %s2035_s14  }
 0xb18 PF: > { %s2062_s4 = sand.u32 1, %s3548_s21   ;;  %p3021_p0 = pnand %p2252_p6, %p3800_p7 }
 0xb19   : > { %s2063_s13 = scalar_lea.sflag [#allocation8], %s2062_s4 }
 0xb1a   : > { %p3022_p2 = pneg %p3021_p0 }
 0xb1c   : > { %3543 = dma.done.wait (%p3022_p2), %s2063_s13, 64  }
 0xb1d   : > { %3545 = vsyncadd (%p3022_p2), %s2063_s13, 4294967232  ;;  %s35_s26 = sadd.s32 1, %s3568_s26   ;;  %s4011_s27 = sld [smem:[#allocation35_spill]] }
 0xb1e   : > { %p32_p5 = scmp.ge.s32.totalorder %s35_s26, 4   ;;  %s4012_s9 = sld [smem:[#allocation34_spill]] }
 0xb1f   : > { %s4013_s21 = smov %s3552_s22  ;;  %s4014_s22 = smov %s3556_s23 }
 0xb20   : > { %s4016_s24 = smov %s3564_s25  ;;  %34 = sbr.rel (!%p32_p5) target bundleno = 24 (0x18), region = 167 }
 0xb23   : > { %s4015_s23 = smov %s4011_s27 }
 0xb24   : > { %s4017_s25 = smov %s4012_s9 }
 0xb25   :  { %2069 = vsyncpa [#allocation7], 1 }
 0xb26   :  { %2071 = vsyncpa [#allocation7 + $0x1], 1 }
 0xb27   :  { %2072 = vsyncpa [#allocation10], 1 }
 0xb28   :  { %2074 = vsyncpa [#allocation10 + $0x1], 1 }
 0xb29   :  { %2075 = vsyncpa [#allocation13], 1 }
 0xb2a   :  { %2076 = vsyncpa [#allocation16], 1 }
 0xb2b   :  { %2077 = vsyncpa [#allocation19], 1 }
 0xb2c   :  { %2078 = vsyncpa [#allocation22], 1 }
 0xb2d   :  { %2079 = vsyncpa [#allocation8], 1 }
 0xb2e   :  { %2081 = vsyncpa [#allocation8 + $0x1], 1 }

</bundles_post_ra>
